<compile_context>
chip_gen: v7x
topology: tpu7x:2x2x1
jax: 0.10.0
libtpu: 0.0.40
codegen_flags: <defaults>
</compile_context>

<pallas_src>
import functools

import jax
import jax.numpy as jnp
from jax.experimental import pallas as pl
from jax.experimental.pallas import tpu as pltpu

EPS = 1e-5
LANE = 128


def _round_up(n, m):
    return ((n + m - 1) // m) * m


def _leaky_relu(x, slope):
    return jnp.where(x > 0, x, slope * x)


def _bn_scale_shift(x, gamma, beta):
    """Training-mode BatchNorm1d folded into per-feature scale/shift.

    (x - mean) * rsqrt(var + eps) * gamma + beta  ==  x * scale + shift
    with scale/shift computed on cheap (1, F) vectors; rsqrt goes to the EUP.
    """
    mean = jnp.mean(x, axis=0, keepdims=True)
    var = jnp.mean(jnp.square(x - mean), axis=0, keepdims=True)
    inv = jax.lax.rsqrt(var + EPS)
    scale = inv * gamma
    shift = beta - mean * scale
    return scale, shift


def generator_kernel(x_ref, w1_ref, w2_ref, w3_ref, w4_ref, p_ref, out_ref,
                     *, hid_p, out_p):
    # p_ref packs the per-feature vectors, one per sublane (static slices, zero cost):
    #   row 0: b1   1: b2   2: b3   3: b4   4: gamma2   5: beta2   6: gamma3   7: beta3
    x = x_ref[...]
    b1 = p_ref[0:1, :hid_p]
    b2 = p_ref[1:2, :hid_p]
    b3 = p_ref[2:3, :hid_p]
    b4 = p_ref[3:4, :out_p]
    g2 = p_ref[4:5, :hid_p]
    be2 = p_ref[5:6, :hid_p]
    g3 = p_ref[6:7, :hid_p]
    be3 = p_ref[7:8, :hid_p]

    hp = jax.lax.Precision.HIGHEST  # deterministic f32 accumulation at this size

    # map1 + leaky_relu(0.01)
    h = jnp.dot(x, w1_ref[...], preferred_element_type=jnp.float32, precision=hp) + b1
    h = _leaky_relu(h, 0.01)

    # batchnorm2 (current-batch statistics)
    s, t = _bn_scale_shift(h, g2, be2)
    h = h * s + t

    # map2 + leaky_relu(0.01)
    h = jnp.dot(h, w2_ref[...], preferred_element_type=jnp.float32, precision=hp) + b2
    h = _leaky_relu(h, 0.01)

    # batchnorm3(map3(h))
    h = jnp.dot(h, w3_ref[...], preferred_element_type=jnp.float32, precision=hp) + b3
    s, t = _bn_scale_shift(h, g3, be3)
    h = h * s + t

    # map4(leaky_relu(h, 0.01)) then leaky_relu(., 0.1)
    h = _leaky_relu(h, 0.01)
    y = jnp.dot(h, w4_ref[...], preferred_element_type=jnp.float32, precision=hp) + b4
    out_ref[...] = _leaky_relu(y, 0.1)        # lane-dense (batch, out_p) unmasked store


def _pad2(w, rows, cols):
    r, c = w.shape
    return jnp.pad(w, ((0, rows - r), (0, cols - c)))


def _pack_rows(vectors, width):
    rows = [jnp.pad(v.reshape(1, -1), ((0, 0), (0, width - v.size))) for v in vectors]
    return jnp.concatenate(rows, axis=0)


def generator_forward(x, params):
    """params = (w1, b1, w2, b2, w3, b3, w4, b4, g2, be2, g3, be3); weights are [in, out]."""
    (w1, b1, w2, b2, w3, b3, w4, b4, g2, be2, g3, be3) = params
    batch, in_f = x.shape
    hidden = w1.shape[1]
    out_f = w4.shape[1]

    hid_p = _round_up(hidden, LANE)
    out_p = _round_up(out_f, LANE)

    # Zero-pad feature dims to 128 lanes.  Padded columns stay exactly 0 through every
    # layer (zero weights/bias -> 0, leaky_relu(0)=0, BN of an all-zero column -> 0), so
    # slicing the output back to out_f is exact.
    w1p = _pad2(w1, in_f, hid_p)
    w2p = _pad2(w2, hid_p, hid_p)
    w3p = _pad2(w3, hid_p, hid_p)
    w4p = _pad2(w4, hid_p, out_p)

    width = max(hid_p, out_p)
    packed = _pack_rows([b1, b2, b3, b4, g2, be2, g3, be3], width)   # (8, width) slab

    vmem = pl.BlockSpec(memory_space=pltpu.MemorySpace.VMEM)
    kernel = functools.partial(generator_kernel, hid_p=hid_p, out_p=out_p)

    out_padded = pl.pallas_call(
        kernel,
        out_shape=jax.ShapeDtypeStruct((batch, out_p), jnp.float32),
        in_specs=[vmem] * 6,
        out_specs=vmem,
    )(x, w1p, w2p, w3p, w4p, packed)

    return out_padded[:, :out_f]


def init_params(key, input_size, hidden_size, output_size):
    """nn.Linear default init (U(-1/sqrt(fan_in), +1/sqrt(fan_in))), BatchNorm1d default
    (gamma=1, beta=0).  Weights stored pre-transposed as [in, out]."""
    def linear(k, fan_in, fan_out):
        kw, kb = jax.random.split(k)
        bound = 1.0 / jnp.sqrt(float(fan_in))
        w = jax.random.uniform(kw, (fan_in, fan_out), jnp.float32, -bound, bound)
        b = jax.random.uniform(kb, (1, fan_out), jnp.float32, -bound, bound)
        return w, b

    k1, k2, k3, k4 = jax.random.split(key, 4)
    w1, b1 = linear(k1, input_size, hidden_size)
    w2, b2 = linear(k2, hidden_size, hidden_size)
    w3, b3 = linear(k3, hidden_size, hidden_size)
    w4, b4 = linear(k4, hidden_size, output_size)
    g2 = jnp.ones((1, hidden_size), jnp.float32)
    be2 = jnp.zeros((1, hidden_size), jnp.float32)
    g3 = jnp.ones((1, hidden_size), jnp.float32)
    be3 = jnp.zeros((1, hidden_size), jnp.float32)
    return (w1, b1, w2, b2, w3, b3, w4, b4, g2, be2, g3, be3)


def _bn_ref(x, gamma, beta):
    mean = jnp.mean(x, axis=0, keepdims=True)
    var = jnp.mean(jnp.square(x - mean), axis=0, keepdims=True)
    return (x - mean) * jax.lax.rsqrt(var + EPS) * gamma + beta


def reference_forward(x, params):
    """Plain-JAX reference (same matmul precision as the kernel)."""
    (w1, b1, w2, b2, w3, b3, w4, b4, g2, be2, g3, be3) = params
    hp = jax.lax.Precision.HIGHEST
    h = _leaky_relu(jnp.dot(x, w1, precision=hp) + b1, 0.01)
    h = _bn_ref(h, g2, be2)
    h = _leaky_relu(jnp.dot(h, w2, precision=hp) + b2, 0.01)
    h = _bn_ref(jnp.dot(h, w3, precision=hp) + b3, g3, be3)
    h = _leaky_relu(h, 0.01)
    return _leaky_relu(jnp.dot(h, w4, precision=hp) + b4, 0.1)


if __name__ == "__main__":
    batch, input_size, hidden_size, output_size = 8, 16, 32, 8

    key = jax.random.PRNGKey(0)
    kx, kp = jax.random.split(key)
    x = jax.random.normal(kx, (batch, input_size), jnp.float32)
    params = init_params(kp, input_size, hidden_size, output_size)

    out = generator_forward(x, params)
    out = jax.block_until_ready(out)

    ref = reference_forward(x, params)
    assert out.shape == (batch, output_size)
    assert jnp.allclose(out, ref, atol=1e-5, rtol=1e-5), "Pallas output mismatch vs reference"

    print("KERNEL_OK")
</pallas_src>

<mosaic_0001>
module attributes {stable_mosaic.version = 11 : i64} {
  func.func @generator_kernel(%arg0: memref<8x16xf32, #tpu.memory_space<vmem>>, %arg1: memref<16x128xf32, #tpu.memory_space<vmem>>, %arg2: memref<128x128xf32, #tpu.memory_space<vmem>>, %arg3: memref<128x128xf32, #tpu.memory_space<vmem>>, %arg4: memref<128x128xf32, #tpu.memory_space<vmem>>, %arg5: memref<8x128xf32, #tpu.memory_space<vmem>>, %arg6: memref<8x128xf32, #tpu.memory_space<vmem>>) attributes {dimension_semantics = [], scalar_prefetch = 0 : i64, scratch_operands = 0 : i64, tpu.core_type = #tpu.core_type<tc>} {
    %c0 = arith.constant 0 : index
    %c0_0 = arith.constant 0 : index
    %0 = vector.load %arg0[%c0, %c0_0] : memref<8x16xf32, #tpu.memory_space<vmem>>, vector<8x16xf32>
    %c0_1 = arith.constant 0 : index
    %c0_2 = arith.constant 0 : index
    %1 = vector.load %arg5[%c0_1, %c0_2] : memref<8x128xf32, #tpu.memory_space<vmem>>, vector<1x128xf32>
    %c1 = arith.constant 1 : index
    %c0_3 = arith.constant 0 : index
    %2 = vector.load %arg5[%c1, %c0_3] : memref<8x128xf32, #tpu.memory_space<vmem>>, vector<1x128xf32>
    %c2 = arith.constant 2 : index
    %c0_4 = arith.constant 0 : index
    %3 = vector.load %arg5[%c2, %c0_4] : memref<8x128xf32, #tpu.memory_space<vmem>>, vector<1x128xf32>
    %c3 = arith.constant 3 : index
    %c0_5 = arith.constant 0 : index
    %4 = vector.load %arg5[%c3, %c0_5] : memref<8x128xf32, #tpu.memory_space<vmem>>, vector<1x128xf32>
    %c4 = arith.constant 4 : index
    %c0_6 = arith.constant 0 : index
    %5 = vector.load %arg5[%c4, %c0_6] : memref<8x128xf32, #tpu.memory_space<vmem>>, vector<1x128xf32>
    %c5 = arith.constant 5 : index
    %c0_7 = arith.constant 0 : index
    %6 = vector.load %arg5[%c5, %c0_7] : memref<8x128xf32, #tpu.memory_space<vmem>>, vector<1x128xf32>
    %c6 = arith.constant 6 : index
    %c0_8 = arith.constant 0 : index
    %7 = vector.load %arg5[%c6, %c0_8] : memref<8x128xf32, #tpu.memory_space<vmem>>, vector<1x128xf32>
    %c7 = arith.constant 7 : index
    %c0_9 = arith.constant 0 : index
    %8 = vector.load %arg5[%c7, %c0_9] : memref<8x128xf32, #tpu.memory_space<vmem>>, vector<1x128xf32>
    %c0_10 = arith.constant 0 : index
    %c0_11 = arith.constant 0 : index
    %9 = vector.load %arg1[%c0_10, %c0_11] : memref<16x128xf32, #tpu.memory_space<vmem>>, vector<16x128xf32>
    %cst = arith.constant dense<0.000000e+00> : vector<8x128xf32>
    %10 = tpu.matmul %0, %9, %cst {dimension_numbers = #tpu.dot_dimension_numbers<[1], [0], [0], [1], [0, 0, 1, 1], [], []>, precision = #tpu.contract_precision<fp32>} : vector<8x16xf32>, vector<16x128xf32>, vector<8x128xf32> -> vector<8x128xf32>
    %11 = vector.broadcast %1 : vector<1x128xf32> to vector<8x128xf32>
    %12 = arith.addf %10, %11 : vector<8x128xf32>
    %cst_12 = arith.constant 0.000000e+00 : f32
    %13 = vector.broadcast %cst_12 : f32 to vector<8x128xf32>
    %14 = arith.cmpf ogt, %12, %13 : vector<8x128xf32>
    %cst_13 = arith.constant 0.00999999977 : f32
    %15 = vector.broadcast %cst_13 : f32 to vector<8x128xf32>
    %16 = arith.mulf %15, %12 : vector<8x128xf32>
    %17 = arith.select %14, %12, %16 : vector<8x128xi1>, vector<8x128xf32>
    %cst_14 = arith.constant dense<0.000000e+00> : vector<128xf32>
    %18 = vector.multi_reduction <add>, %17, %cst_14 [0] : vector<8x128xf32> to vector<128xf32>
    %19 = vector.shape_cast %18 : vector<128xf32> to vector<1x128xf32>
    %cst_15 = arith.constant 8.000000e+00 : f32
    %20 = vector.broadcast %cst_15 : f32 to vector<1x128xf32>
    %21 = arith.divf %19, %20 : vector<1x128xf32>
    %22 = vector.broadcast %21 : vector<1x128xf32> to vector<8x128xf32>
    %23 = arith.subf %17, %22 : vector<8x128xf32>
    %24 = arith.mulf %23, %23 : vector<8x128xf32>
    %cst_16 = arith.constant dense<0.000000e+00> : vector<128xf32>
    %25 = vector.multi_reduction <add>, %24, %cst_16 [0] : vector<8x128xf32> to vector<128xf32>
    %26 = vector.shape_cast %25 : vector<128xf32> to vector<1x128xf32>
    %cst_17 = arith.constant 8.000000e+00 : f32
    %27 = vector.broadcast %cst_17 : f32 to vector<1x128xf32>
    %28 = arith.divf %26, %27 : vector<1x128xf32>
    %cst_18 = arith.constant 9.99999974E-6 : f32
    %29 = vector.broadcast %cst_18 : f32 to vector<1x128xf32>
    %30 = arith.addf %28, %29 : vector<1x128xf32>
    %31 = math.rsqrt %30 : vector<1x128xf32>
    %32 = arith.mulf %31, %5 : vector<1x128xf32>
    %33 = arith.mulf %21, %32 : vector<1x128xf32>
    %34 = arith.subf %6, %33 : vector<1x128xf32>
    %35 = vector.broadcast %32 : vector<1x128xf32> to vector<8x128xf32>
    %36 = arith.mulf %17, %35 : vector<8x128xf32>
    %37 = vector.broadcast %34 : vector<1x128xf32> to vector<8x128xf32>
    %38 = arith.addf %36, %37 : vector<8x128xf32>
    %c0_19 = arith.constant 0 : index
    %c0_20 = arith.constant 0 : index
    %39 = vector.load %arg2[%c0_19, %c0_20] : memref<128x128xf32, #tpu.memory_space<vmem>>, vector<128x128xf32>
    %cst_21 = arith.constant dense<0.000000e+00> : vector<8x128xf32>
    %40 = tpu.matmul %38, %39, %cst_21 {dimension_numbers = #tpu.dot_dimension_numbers<[1], [0], [0], [1], [0, 0, 1, 1], [], []>, precision = #tpu.contract_precision<fp32>} : vector<8x128xf32>, vector<128x128xf32>, vector<8x128xf32> -> vector<8x128xf32>
    %41 = vector.broadcast %2 : vector<1x128xf32> to vector<8x128xf32>
    %42 = arith.addf %40, %41 : vector<8x128xf32>
    %cst_22 = arith.constant 0.000000e+00 : f32
    %43 = vector.broadcast %cst_22 : f32 to vector<8x128xf32>
    %44 = arith.cmpf ogt, %42, %43 : vector<8x128xf32>
    %cst_23 = arith.constant 0.00999999977 : f32
    %45 = vector.broadcast %cst_23 : f32 to vector<8x128xf32>
    %46 = arith.mulf %45, %42 : vector<8x128xf32>
    %47 = arith.select %44, %42, %46 : vector<8x128xi1>, vector<8x128xf32>
    %c0_24 = arith.constant 0 : index
    %c0_25 = arith.constant 0 : index
    %48 = vector.load %arg3[%c0_24, %c0_25] : memref<128x128xf32, #tpu.memory_space<vmem>>, vector<128x128xf32>
    %cst_26 = arith.constant dense<0.000000e+00> : vector<8x128xf32>
    %49 = tpu.matmul %47, %48, %cst_26 {dimension_numbers = #tpu.dot_dimension_numbers<[1], [0], [0], [1], [0, 0, 1, 1], [], []>, precision = #tpu.contract_precision<fp32>} : vector<8x128xf32>, vector<128x128xf32>, vector<8x128xf32> -> vector<8x128xf32>
    %50 = vector.broadcast %3 : vector<1x128xf32> to vector<8x128xf32>
    %51 = arith.addf %49, %50 : vector<8x128xf32>
    %cst_27 = arith.constant dense<0.000000e+00> : vector<128xf32>
    %52 = vector.multi_reduction <add>, %51, %cst_27 [0] : vector<8x128xf32> to vector<128xf32>
    %53 = vector.shape_cast %52 : vector<128xf32> to vector<1x128xf32>
    %cst_28 = arith.constant 8.000000e+00 : f32
    %54 = vector.broadcast %cst_28 : f32 to vector<1x128xf32>
    %55 = arith.divf %53, %54 : vector<1x128xf32>
    %56 = vector.broadcast %55 : vector<1x128xf32> to vector<8x128xf32>
    %57 = arith.subf %51, %56 : vector<8x128xf32>
    %58 = arith.mulf %57, %57 : vector<8x128xf32>
    %cst_29 = arith.constant dense<0.000000e+00> : vector<128xf32>
    %59 = vector.multi_reduction <add>, %58, %cst_29 [0] : vector<8x128xf32> to vector<128xf32>
    %60 = vector.shape_cast %59 : vector<128xf32> to vector<1x128xf32>
    %cst_30 = arith.constant 8.000000e+00 : f32
    %61 = vector.broadcast %cst_30 : f32 to vector<1x128xf32>
    %62 = arith.divf %60, %61 : vector<1x128xf32>
    %cst_31 = arith.constant 9.99999974E-6 : f32
    %63 = vector.broadcast %cst_31 : f32 to vector<1x128xf32>
    %64 = arith.addf %62, %63 : vector<1x128xf32>
    %65 = math.rsqrt %64 : vector<1x128xf32>
    %66 = arith.mulf %65, %7 : vector<1x128xf32>
    %67 = arith.mulf %55, %66 : vector<1x128xf32>
    %68 = arith.subf %8, %67 : vector<1x128xf32>
    %69 = vector.broadcast %66 : vector<1x128xf32> to vector<8x128xf32>
    %70 = arith.mulf %51, %69 : vector<8x128xf32>
    %71 = vector.broadcast %68 : vector<1x128xf32> to vector<8x128xf32>
    %72 = arith.addf %70, %71 : vector<8x128xf32>
    %cst_32 = arith.constant 0.000000e+00 : f32
    %73 = vector.broadcast %cst_32 : f32 to vector<8x128xf32>
    %74 = arith.cmpf ogt, %72, %73 : vector<8x128xf32>
    %cst_33 = arith.constant 0.00999999977 : f32
    %75 = vector.broadcast %cst_33 : f32 to vector<8x128xf32>
    %76 = arith.mulf %75, %72 : vector<8x128xf32>
    %77 = arith.select %74, %72, %76 : vector<8x128xi1>, vector<8x128xf32>
    %c0_34 = arith.constant 0 : index
    %c0_35 = arith.constant 0 : index
    %78 = vector.load %arg4[%c0_34, %c0_35] : memref<128x128xf32, #tpu.memory_space<vmem>>, vector<128x128xf32>
    %cst_36 = arith.constant dense<0.000000e+00> : vector<8x128xf32>
    %79 = tpu.matmul %77, %78, %cst_36 {dimension_numbers = #tpu.dot_dimension_numbers<[1], [0], [0], [1], [0, 0, 1, 1], [], []>, precision = #tpu.contract_precision<fp32>} : vector<8x128xf32>, vector<128x128xf32>, vector<8x128xf32> -> vector<8x128xf32>
    %80 = vector.broadcast %4 : vector<1x128xf32> to vector<8x128xf32>
    %81 = arith.addf %79, %80 : vector<8x128xf32>
    %cst_37 = arith.constant 0.000000e+00 : f32
    %82 = vector.broadcast %cst_37 : f32 to vector<8x128xf32>
    %83 = arith.cmpf ogt, %81, %82 : vector<8x128xf32>
    %cst_38 = arith.constant 1.000000e-01 : f32
    %84 = vector.broadcast %cst_38 : f32 to vector<8x128xf32>
    %85 = arith.mulf %84, %81 : vector<8x128xf32>
    %86 = arith.select %83, %81, %85 : vector<8x128xi1>, vector<8x128xf32>
    %c0_39 = arith.constant 0 : index
    %c0_40 = arith.constant 0 : index
    %87 = vector.load %arg6[%c0_39, %c0_40] : memref<8x128xf32, #tpu.memory_space<vmem>>, vector<8x128xf32>
    tpu.vector_store %arg6[%c0_39, %c0_40], %86 {strides = array<i32>} : memref<8x128xf32, #tpu.memory_space<vmem>>, vector<8x128xf32>,
    return
  }
}

</mosaic_0001>

<bundles_post_ra>
// kernel: tpu_custom_call.1
= control target key start
LH: loop header
LB: loop body
LE: loop exit
PB: predicated region body
PF: predicated region fallthrough
CT: control target
= control target key end

     0   :  { %11 = vsyncpa [#allocation3], 0  ;;  %s5358_s0 = inlined_call_operand.hbm [shape: f32[8,16], index: 0, kind: input, shape index: {}]   ;;  %s5359_s1 = inlined_call_operand.hbm [shape: f32[16,128], index: 1, kind: input, shape index: {}]   ;;  %s5360_s2 = inlined_call_operand.hbm [shape: f32[128,128], index: 2, kind: input, shape index: {}]   ;;  %s5361_s3 = inlined_call_operand.hbm [shape: f32[128,128], index: 3, kind: input, shape index: {}]   ;;  %s5362_s4 = inlined_call_operand.hbm [shape: f32[128,128], index: 4, kind: input, shape index: {}]   ;;  %s5363_s5 = inlined_call_operand.vmem [shape: f32[8,128], index: 5, kind: input, shape index: {}]   ;;  %s5364_s6 = inlined_call_operand.hbm [shape: f32[8,128], index: 6, kind: output, shape index: {}]  }
   0x1   :  { %12 = vsyncpa [#allocation6], 0 }
   0x2   :  { %13 = vsyncpa [#allocation9], 0 }
   0x3   :  { %14 = vsyncpa [#allocation4], 0  ;;  %s4291_s21 = smov [#allocation5]   ;;  %s4151_s25 = scalar_lea.hbm %s5359_s1, 256 }
   0x4   :  { %s30_s22 = sshll.u32 %s4291_s21, 4  ;;  %p4152_p0 = scmp.ne.s32.totalorder %s5359_s1, %s4151_s25  ;;  %s31_s22 = int_to_ptr.vmem [resolvable:$true] %s30_s22 }
   0x5   :  { %p4155_p1 = scmp.lt.u32.totalorder %s4151_s25, %s5359_s1 }
   0x7   :  { %p4157_p2 = pnand %p4155_p1, %p4152_p0 }
   0x9   :  { %4160 = shalt.err (!%p4157_p2)
}
   0xa   :  { %s4161_s30 = scalar_lea.vmem %s31_s22, 256  ;;  %p4166_p4 = scmp.lt.s32.totalorder %s31_s22, %s31_s22 }
   0xb   :  { %p4162_p3 = scmp.ne.s32.totalorder %s31_s22, %s4161_s30  ;;  %p4167_p5 = scmp.lt.s32.totalorder %s4161_s30, %s4161_s30 }
   0xd   :  { %p4168_p6 = por %p4167_p5, %p4166_p4 }
   0xf   :  { %p4169_p7 = pnand %p4168_p6, %p4162_p3 }
  0x11   :  { %4172 = shalt.err (!%p4169_p7)
}
  0x12   :  { %s4292_s7 = smov 128   ;;  %s4293_s8 = smov 8  }
  0x13   :  { %36 = dma.hbm_to_vmem [thread:$0]  %s5359_s1, 256, %s31_s22, [#allocation6], %s4292_s7, %s4292_s7, %s4293_s8  }
  0x14   :  { %s4294_s11 = smov [#allocation8]   ;;  %s4295_s13 = smov [#allocation2]  }
  0x15   :  { %s54_s12 = sshll.u32 %s4294_s11, 4  ;;  %s21_s14 = sshll.u32 %s4295_s13, 4  ;;  %s55_s12 = int_to_ptr.vmem [resolvable:$true] %s54_s12  ;;  %s22_s14 = int_to_ptr.vmem [resolvable:$true] %s21_s14 }
  0x16   :  { %s4173_s17 = scalar_lea.hbm %s5361_s3, 2048 }
  0x17   :  { %p4174_p8 = scmp.ne.s32.totalorder %s5361_s3, %s4173_s17  ;;  %p4177_p9 = scmp.lt.u32.totalorder %s4173_s17, %s5361_s3 }
  0x19   :  { %p4179_p10 = pnand %p4177_p9, %p4174_p8 }
  0x1b   :  { %4182 = shalt.err (!%p4179_p10)
}
  0x1c   :  { %s4183_s1 = scalar_lea.vmem %s55_s12, 2048  ;;  %p4188_p12 = scmp.lt.s32.totalorder %s55_s12, %s55_s12 }
  0x1d   :  { %p4184_p11 = scmp.ne.s32.totalorder %s55_s12, %s4183_s1  ;;  %p4189_p13 = scmp.lt.s32.totalorder %s4183_s1, %s4183_s1 }
  0x1f   :  { %p4190_p0 = por %p4189_p13, %p4188_p12 }
  0x21   :  { %p4191_p1 = pnand %p4190_p0, %p4184_p11 }
  0x23   :  { %4194 = shalt.err (!%p4191_p1)
}
  0x24   :  { %60 = dma.hbm_to_vmem [thread:$0]  %s5361_s3, 2048, %s55_s12, [#allocation9], %s4292_s7, %s4292_s7, %s4293_s8  }
  0x25   :  { %s4195_s26 = scalar_lea.hbm %s5358_s0, 128 }
  0x26   :  { %p4196_p2 = scmp.ne.s32.totalorder %s5358_s0, %s4195_s26  ;;  %p4199_p3 = scmp.lt.u32.totalorder %s4195_s26, %s5358_s0 }
  0x28   :  { %p4201_p4 = pnand %p4199_p3, %p4196_p2 }
  0x2a   :  { %4204 = shalt.err (!%p4201_p4)
}
  0x2b   :  { %s4205_s9 = scalar_lea.vmem %s22_s14, 128  ;;  %p4210_p6 = scmp.lt.s32.totalorder %s22_s14, %s22_s14 }
  0x2c   :  { %p4206_p5 = scmp.ne.s32.totalorder %s22_s14, %s4205_s9  ;;  %p4211_p7 = scmp.lt.s32.totalorder %s4205_s9, %s4205_s9 }
  0x2e   :  { %p4212_p8 = por %p4211_p7, %p4210_p6 }
  0x30   :  { %p4213_p9 = pnand %p4212_p8, %p4206_p5 }
  0x32   :  { %4216 = shalt.err (!%p4213_p9)
}
  0x33   :  { %24 = dma.hbm_to_vmem [thread:$0]  %s5358_s0, 128, %s22_s14, [#allocation3]  }
  0x34   :  { %s4296_s11 = smov [#allocation7]   ;;  %s4297_s13 = smov [#allocation10]  }
  0x35   :  { %s42_s12 = sshll.u32 %s4296_s11, 4  ;;  %s66_s15 = sshll.u32 %s4297_s13, 4  ;;  %s43_s12 = int_to_ptr.vmem [resolvable:$true] %s42_s12  ;;  %s67_s15 = int_to_ptr.vmem [resolvable:$true] %s66_s15 }
  0x36   :  { %s4217_s18 = scalar_lea.hbm %s5360_s2, 2048 }
  0x37   :  { %p4218_p10 = scmp.ne.s32.totalorder %s5360_s2, %s4217_s18  ;;  %p4221_p11 = scmp.lt.u32.totalorder %s4217_s18, %s5360_s2 }
  0x39   :  { %p4223_p12 = pnand %p4221_p11, %p4218_p10 }
  0x3b   :  { %4226 = shalt.err (!%p4223_p12)
}
  0x3c   :  { %s4227_s0 = scalar_lea.vmem %s43_s12, 2048  ;;  %p4232_p0 = scmp.lt.s32.totalorder %s43_s12, %s43_s12 }
  0x3d   :  { %p4228_p13 = scmp.ne.s32.totalorder %s43_s12, %s4227_s0  ;;  %p4233_p1 = scmp.lt.s32.totalorder %s4227_s0, %s4227_s0 }
  0x3f   :  { %p4234_p2 = por %p4233_p1, %p4232_p0 }
  0x41   :  { %p4235_p3 = pnand %p4234_p2, %p4228_p13 }
  0x43   :  { %4238 = shalt.err (!%p4235_p3)
}
  0x44   :  { %48 = dma.hbm_to_vmem [thread:$0]  %s5360_s2, 2048, %s43_s12, [#allocation6], %s4292_s7, %s4292_s7, %s4293_s8  }
  0x45   :  { %s4239_s25 = scalar_lea.hbm %s5362_s4, 2048 }
  0x46   :  { %p4240_p4 = scmp.ne.s32.totalorder %s5362_s4, %s4239_s25  ;;  %p4243_p5 = scmp.lt.u32.totalorder %s4239_s25, %s5362_s4 }
  0x48   :  { %p4245_p6 = pnand %p4243_p5, %p4240_p4 }
  0x4a   :  { %4248 = shalt.err (!%p4245_p6)
}
  0x4b   :  { %s4249_s30 = scalar_lea.vmem %s67_s15, 2048  ;;  %p4254_p8 = scmp.lt.s32.totalorder %s67_s15, %s67_s15 }
  0x4c   :  { %p4250_p7 = scmp.ne.s32.totalorder %s67_s15, %s4249_s30  ;;  %p4255_p9 = scmp.lt.s32.totalorder %s4249_s30, %s4249_s30 }
  0x4e   :  { %p4256_p10 = por %p4255_p9, %p4254_p8 }
  0x50   :  { %p4257_p11 = pnand %p4256_p10, %p4250_p7 }
  0x52   :  { %4260 = shalt.err (!%p4257_p11)
}
  0x53   :  { %72 = dma.hbm_to_vmem [thread:$0]  %s5362_s4, 2048, %s67_s15, [#allocation9], %s4292_s7, %s4292_s7, %s4293_s8  }
  0x54   :  { %4283 = dma.done.wait [#allocation3], 128  }
  0x55   :  { %4284 = vsyncadd [#allocation3], 4294967168 }
  0x56   :  { %4285 = dma.done.wait [#allocation6], 2304  }
  0x57   :  { %4286 = vsyncadd [#allocation6], 4294964992 }
  0x58   :  { %4287 = dma.done.wait [#allocation9], 4096  }
  0x59   :  { %4288 = vsyncadd [#allocation9], 4294963200  ;;  %v5369_v0 = vmov 0.0|0.0   ;;  %vm4299_vm0 = vmmov 0   ;;  %v5371_v1 = vmov 0.0   ;;  %vm105_vm1 = vcmask 130048  }
  0x5a   :  { %3653 = vmatprep.subr.bf16.mxu0 %v5369_v0  ;;  %2997 = vmatprep.mubr.msk.f32.mxu0 %vm4299_vm0, %v5371_v1  ;;  %v99_v2 = vld [vmem:[#allocation5] sm:$0xff]  ;;  %v100_v3 = vld [vmem:[#allocation5 + $0x8] sm:$0xff]  ;;  %v90_v4 = vld [vmem:[#allocation2] sm:$0xff]  ;;  %s4301_s0 = smov [#allocation11]  }
  0x5b   :  { %3644 = vmatprep.subr.bf16.mxu1 %v5369_v0  ;;  %2976 = vmatprep.mubr.msk.f32.mxu1 %vm4299_vm0, %v5371_v1  ;;  %v110_v5 = vand.u32 4294901760, %v99_v2  ;;  %v113_v6 = vand.u32 4294901760, %v100_v3  ;;  %v107_v7 = vsel %vm105_vm1, %v90_v4, 0  ;;  %v4433_v25 = vld [vmem:[#allocation7] sm:$0xff]  ;;  %v4435_v26 = vld [vmem:[#allocation7 + $0x8] sm:$0xff]  ;;  %v4445_v30 = vld [vmem:[#allocation7 + $0x10] sm:$0xff] }
  0x5c   :  { %v176_v8 = vand.u32 4294901760, %v107_v7  ;;  %v624_v27 = vand.u32 4294901760, %v4433_v25  ;;  %v627_v28 = vand.u32 4294901760, %v4435_v26  ;;  %v4447_v31 = vld [vmem:[#allocation7 + $0x18] sm:$0xff]  ;;  %v630_v32 = vand.u32 4294901760, %v4445_v30  ;;  %v607_v35 = vld [vmem:[#allocation7 + $0x20] sm:$0xff] }
  0x5d   :  { %v3645_v9 = vpack.c.bf16 %v113_v6, %v110_v5  ;;  %v188_v10 = vsub.f32 %v99_v2, %v110_v5  ;;  %v195_v11 = vsub.f32 %v100_v3, %v113_v6  ;;  %v633_v33 = vand.u32 4294901760, %v4447_v31  ;;  %v608_v36 = vld [vmem:[#allocation7 + $0x28] sm:$0xff]  ;;  %v609_v40 = vld [vmem:[#allocation7 + $0x30] sm:$0xff]  ;;  %v610_v41 = vld [vmem:[#allocation7 + $0x38] sm:$0xff]  ;;  %s2633_s14 = sshll.u32 %s4301_s0, 4  ;;  %s2634_s14 = int_to_ptr.vmem [resolvable:$true] %s2633_s14 }
  0x5e   :  { %v177_v12 = vsub.f32 %v107_v7, %v176_v8  ;;  %v4443_v29 = vpack.c.bf16 %v627_v28, %v624_v27  ;;  %v636_v37 = vand.u32 4294901760, %v607_v35  ;;  %v639_v38 = vand.u32 4294901760, %v608_v36  ;;  %v611_v45 = vld [vmem:[#allocation7 + $0x40] sm:$0xff]  ;;  %v612_v46 = vld [vmem:[#allocation7 + $0x48] sm:$0xff]  ;;  %v613_v50 = vld [vmem:[#allocation7 + $0x50] sm:$0xff]  ;;  %s4261_s22 = scalar_lea.vmem %s2634_s14, 128  ;;  %p4266_p13 = scmp.lt.s32.totalorder %s2634_s14, %s2634_s14 }
  0x5f   :  { %3655 = vmatpush3.bf16.msra.mxu0 %v3645_v9  ;;  %3646 = vmatpush3.bf16.msra.mxu1 %v3645_v9  ;;  %v189_v13 = vand.u32 4294901760, %v188_v10  ;;  %v196_v14 = vand.u32 4294901760, %v195_v11  ;;  %v3651_v24 = vpack.c.bf16 %v195_v11, %v188_v10  ;;  %v4455_v34 = vpack.c.bf16 %v633_v33, %v630_v32  ;;  %v614_v51 = vld [vmem:[#allocation7 + $0x58] sm:$0xff]  ;;  %v615_v55 = vld [vmem:[#allocation7 + $0x60] sm:$0xff]  ;;  %v616_v56 = vld [vmem:[#allocation7 + $0x68] sm:$0xff]  ;;  %p4262_p12 = scmp.ne.s32.totalorder %s2634_s14, %s4261_s22  ;;  %p4267_p0 = scmp.lt.s32.totalorder %s4261_s22, %s4261_s22 }
  0x60   :  { %v178_v15 = vand.u32 4294901760, %v177_v12  ;;  %3647 = vmatprep.subr.bf16.mxu1 %v5369_v0  ;;  %3656 = vmatprep.subr.bf16.mxu0 %v5369_v0  ;;  %v4461_v39 = vpack.c.bf16 %v639_v38, %v636_v37  ;;  %v642_v42 = vand.u32 4294901760, %v609_v40  ;;  %v645_v43 = vand.u32 4294901760, %v610_v41  ;;  %v617_v60 = vld [vmem:[#allocation7 + $0x70] sm:$0xff]  ;;  %v618_v61 = vld [vmem:[#allocation7 + $0x78] sm:$0xff] }
  0x61   :  { %v190_v16 = vsub.f32 %v188_v10, %v189_v13  ;;  %v197_v17 = vsub.f32 %v195_v11, %v196_v14  ;;  %v3657_v18 = vpack.c.bf16 %v196_v14, %v189_v13  ;;  %v648_v47 = vand.u32 4294901760, %v611_v45  ;;  %p4268_p1 = por %p4267_p0, %p4266_p13 }
  0x62   :  { %2998 = vmatmul.mubr.f32.vlgmr.msra.gmra.mrb[0].mxu0 %v178_v15  ;;  %v179_v19 = vsub.f32 %v177_v12, %v178_v15  ;;  %v4467_v44 = vpack.c.bf16 %v645_v43, %v642_v42  ;;  %v651_v48 = vand.u32 4294901760, %v612_v46  ;;  %v654_v52 = vand.u32 4294901760, %v613_v50 }
  0x63   :  { %v191_v20 = vand.u32 4294901760, %v190_v16  ;;  %v198_v21 = vand.u32 4294901760, %v197_v17  ;;  %3658 = vmatpush3.bf16.msra.mxu0 %v3657_v18  ;;  %3004 = vmatprep.mubr.msk.f32.mxu0 %vm4299_vm0, %v5371_v1  ;;  %v657_v53 = vand.u32 4294901760, %v614_v51  ;;  %v660_v57 = vand.u32 4294901760, %v615_v55  ;;  %p4269_p2 = pnand %p4268_p1, %p4262_p12 }
  0x64   :  { %v180_v22 = vand.u32 4294901760, %v179_v19  ;;  %3659 = vmatprep.subr.bf16.mxu0 %v5369_v0  ;;  %v4473_v49 = vpack.c.bf16 %v651_v48, %v648_v47  ;;  %v663_v58 = vand.u32 4294901760, %v616_v56  ;;  %v666_v62 = vand.u32 4294901760, %v617_v60 }
  0x65   :  { %v3648_v23 = vpack.c.bf16 %v198_v21, %v191_v20  ;;  %v4479_v54 = vpack.c.bf16 %v657_v53, %v654_v52  ;;  %v669_v63 = vand.u32 4294901760, %v618_v61  ;;  %v4494_v2 = vsub.f32 %v4433_v25, %v624_v27 }
  0x66   :  { %2977 = vmatmul.mubr.f32.vlgmr.msra.gmra.mrb[0].mxu1 %v180_v22  ;;  %v4485_v59 = vpack.c.bf16 %v663_v58, %v660_v57  ;;  %v4499_v3 = vsub.f32 %v4435_v26, %v627_v28  ;;  %v4502_v4 = vsub.f32 %v4445_v30, %v630_v32  ;;  %v4505_v5 = vsub.f32 %v4447_v31, %v633_v33 }
  0x67   :  { %3649 = vmatpush3.bf16.msra.mxu1 %v3648_v23  ;;  %2983 = vmatprep.mubr.msk.f32.mxu1 %vm4299_vm0, %v5371_v1  ;;  %v4507_v6 = vsub.f32 %v607_v35, %v636_v37  ;;  %v4509_v7 = vsub.f32 %v608_v36, %v639_v38  ;;  %v4515_v10 = vsub.f32 %v611_v45, %v648_v47  ;;  %v717_v19 = vand.u32 4294901760, %v4494_v2 }
  0x68   :  { %3650 = vmatprep.subr.bf16.mxu1 %v5369_v0  ;;  %v4517_v11 = vsub.f32 %v612_v46, %v651_v48  ;;  %v4521_v13 = vsub.f32 %v614_v51, %v657_v53  ;;  %v4523_v14 = vsub.f32 %v615_v55, %v660_v57  ;;  %v4525_v15 = vsub.f32 %v616_v56, %v663_v58 }
  0x69   :  { %v4527_v16 = vpack.c.bf16 %v669_v63, %v666_v62  ;;  %v4529_v17 = vsub.f32 %v617_v60, %v666_v62  ;;  %v4531_v18 = vsub.f32 %v618_v61, %v669_v63  ;;  %v724_v20 = vand.u32 4294901760, %v4499_v3 }
  0x6a   :  { %3005 = vmatmul.mubr.f32.vlgmr.msra.gmra.mrb[0].mxu0 %v176_v8  ;;  %v718_v22 = vsub.f32 %v4494_v2, %v717_v19  ;;  %v738_v25 = vand.u32 4294901760, %v4505_v5  ;;  %v745_v36 = vand.u32 4294901760, %v4507_v6  ;;  %v752_v37 = vand.u32 4294901760, %v4509_v7 }
  0x6b   :  { %3661 = vmatpush3.bf16.msra.mxu0 %v3645_v9  ;;  %3011 = vmatprep.mubr.msk.f32.mxu0 %vm4299_vm0, %v5371_v1  ;;  %v4513_v9 = vsub.f32 %v610_v41, %v645_v43  ;;  %v4538_v21 = vpack.c.bf16 %v724_v20, %v717_v19  ;;  %v725_v23 = vsub.f32 %v4499_v3, %v724_v20  ;;  %v773_v56 = vand.u32 4294901760, %v4515_v10 }
  0x6c   :  { %3662 = vmatprep.subr.bf16.mxu0 %v5369_v0  ;;  %v719_v26 = vand.u32 4294901760, %v718_v22  ;;  %v739_v31 = vsub.f32 %v4505_v5, %v738_v25  ;;  %v746_v41 = vsub.f32 %v4507_v6, %v745_v36  ;;  %v780_v57 = vand.u32 4294901760, %v4517_v11 }
  0x6d   :  { %v726_v27 = vand.u32 4294901760, %v725_v23  ;;  %v766_v47 = vand.u32 4294901760, %v4513_v9  ;;  %v774_v61 = vsub.f32 %v4515_v10, %v773_v56  ;;  %v794_v22 = vand.u32 4294901760, %v4521_v13 }
  0x6e   :  { %2984 = vmatmul.mubr.f32.vlgmr.msra.gmra.mrb[0].mxu1 %v176_v8  ;;  %v740_v35 = vand.u32 4294901760, %v739_v31  ;;  %v747_v43 = vand.u32 4294901760, %v746_v41  ;;  %v4571_v60 = vpack.c.bf16 %v780_v57, %v773_v56  ;;  %v781_v62 = vsub.f32 %v4517_v11, %v780_v57 }
  0x6f   :  { %3652 = vmatpush3.bf16.msra.mxu1 %v3651_v24  ;;  %2990 = vmatprep.mubr.msk.f32.mxu1 %vm4299_vm0, %v5371_v1  ;;  %v731_v24 = vand.u32 4294901760, %v4502_v4  ;;  %v4549_v32 = vpack.c.bf16 %v726_v27, %v719_v26  ;;  %v775_v63 = vand.u32 4294901760, %v774_v61  ;;  %v795_v26 = vsub.f32 %v4521_v13, %v794_v22 }
  0x70   :  { %3734 = vmatprep.subr.bf16.mxu1 %v5369_v0  ;;  %v782_v19 = vand.u32 4294901760, %v781_v62  ;;  %v801_v31 = vand.u32 4294901760, %v4523_v14 }
  0x71   :  { %v4545_v28 = vpack.c.bf16 %v738_v25, %v731_v24  ;;  %v732_v30 = vsub.f32 %v4502_v4, %v731_v24 }
  0x72   :  { %3012 = vmatmul.mubr.f32.vlgmr.msra.gmra.mrb[0].mxu0 %v176_v8  ;;  %v4511_v8 = vsub.f32 %v609_v40, %v642_v42  ;;  %v4555_v40 = vpack.c.bf16 %v752_v37, %v745_v36  ;;  %v753_v42 = vsub.f32 %v4509_v7, %v752_v37  ;;  %v4577_v23 = vpack.c.bf16 %v782_v19, %v775_v63 }
  0x73   :  { %3046 = vmatprep.mubr.msk.f32.mxu0 %vm4299_vm0, %v5371_v1  ;;  %3664 = vmatpush3.bf16.msra.mxu0 %v4443_v29  ;;  %v733_v33 = vand.u32 4294901760, %v732_v30  ;;  %v796_v30 = vand.u32 4294901760, %v795_v26  ;;  %v802_v37 = vsub.f32 %v4523_v14, %v801_v31 }
  0x74   :  { %3665 = vmatprep.subr.bf16.mxu0 %v5369_v0  ;;  %v754_v45 = vand.u32 4294901760, %v753_v42  ;;  %v759_v46 = vand.u32 4294901760, %v4511_v8 }
  0x75   :  { %v4553_v38 = vpack.c.bf16 %v740_v35, %v733_v33  ;;  %v808_v33 = vand.u32 4294901760, %v4525_v15  ;;  %v803_v42 = vand.u32 4294901760, %v802_v37 }
  0x76   :  { %2991 = vmatmul.mubr.f32.vlgmr.msra.gmra.mrb[0].mxu1 %v177_v12  ;;  %v4519_v12 = vsub.f32 %v613_v50, %v654_v52  ;;  %v4561_v48 = vpack.c.bf16 %v754_v45, %v747_v43  ;;  %v4563_v50 = vpack.c.bf16 %v766_v47, %v759_v46  ;;  %v760_v51 = vsub.f32 %v4511_v8, %v759_v46 }
  0x77   :  { %3151 = vmatprep.mubr.msk.f32.mxu1 %vm4299_vm0, %v5371_v1  ;;  %3736 = vmatpush3.bf16.msra.mxu1 %v4443_v29  ;;  %v767_v52 = vsub.f32 %v4513_v9, %v766_v47  ;;  %v4587_v36 = vpack.c.bf16 %v808_v33, %v801_v31  ;;  %v809_v41 = vsub.f32 %v4525_v15, %v808_v33  ;;  %v815_v45 = vand.u32 4294901760, %v4529_v17 }
  0x78   :  { %3737 = vmatprep.subr.bf16.mxu1 %v5369_v0  ;;  %3667 = vmatpush3.bf16.msra.mxu0 %v4455_v34  ;;  %v761_v53 = vand.u32 4294901760, %v760_v51  ;;  %v787_v20 = vand.u32 4294901760, %v4519_v12  ;;  %v822_v46 = vand.u32 4294901760, %v4531_v18 }
  0x79   :  { %3668 = vmatprep.subr.bf16.mxu0 %v5369_v0  ;;  %v768_v55 = vand.u32 4294901760, %v767_v52  ;;  %v810_v43 = vand.u32 4294901760, %v809_v41  ;;  %v816_v52 = vsub.f32 %v4529_v17, %v815_v45 }
  0x7a   :  { %v4579_v24 = vpack.c.bf16 %v794_v22, %v787_v20  ;;  %v788_v25 = vsub.f32 %v4519_v12, %v787_v20  ;;  %v4595_v51 = vpack.c.bf16 %v822_v46, %v815_v45  ;;  %v4654_v22 = vld [vmem:[#allocation8 + $0x28] sm:$0xff] }
  0x7b   :  { %3739 = vmatpush3.bf16.msra.mxu1 %v4455_v34  ;;  %v4569_v58 = vpack.c.bf16 %v768_v55, %v761_v53  ;;  %v4593_v47 = vpack.c.bf16 %v810_v43, %v803_v42  ;;  %v823_v53 = vsub.f32 %v4531_v18, %v822_v46  ;;  %v817_v55 = vand.u32 4294901760, %v816_v52  ;;  %v4620_v52 = vld [vmem:[#allocation8] sm:$0xff] }
  0x7c   :  { %3740 = vmatprep.subr.bf16.mxu1 %v5369_v0  ;;  %3670 = vmatpush3.bf16.msra.mxu0 %v4461_v39  ;;  %v789_v27 = vand.u32 4294901760, %v788_v25  ;;  %v4652_v42 = vld [vmem:[#allocation8 + $0x20] sm:$0xff]  ;;  %v5379_v19 = vand.u32 4294901760, %v4654_v22 }
  0x7d   :  { %3671 = vmatprep.subr.bf16.mxu0 %v5369_v0  ;;  %v824_v56 = vand.u32 4294901760, %v823_v53  ;;  %v4622_v53 = vld [vmem:[#allocation8 + $0x8] sm:$0xff]  ;;  %v5377_v20 = vand.u32 4294901760, %v4652_v42 }
  0x7e   :  { %v4585_v35 = vpack.c.bf16 %v796_v30, %v789_v27  ;;  %v2644_v27 = vld [vmem:[%s5363_s5] ss:$0 sm:$0xff]  ;;  %v4626_v30 = vld [vmem:[#allocation8 + $0x10] sm:$0xff] }
  0x7f   :  { %3742 = vmatpush3.bf16.msra.mxu1 %v4461_v39  ;;  %v4599_v57 = vpack.c.bf16 %v824_v56, %v817_v55  ;;  %v5365_v56 = vand.u32 4294901760, %v4620_v52 }
  0x80   :  { %3743 = vmatprep.subr.bf16.mxu1 %v5369_v0  ;;  %3673 = vmatpush3.bf16.msra.mxu0 %v4467_v44 }
  0x81   :  { %3674 = vmatprep.subr.bf16.mxu0 %v5369_v0 }
  0x83   :  { %3745 = vmatpush3.bf16.msra.mxu1 %v4467_v44 }
  0x84   :  { %3746 = vmatprep.subr.bf16.mxu1 %v5369_v0  ;;  %3676 = vmatpush3.bf16.msra.mxu0 %v4473_v49 }
  0x85   :  { %3677 = vmatprep.subr.bf16.mxu0 %v5369_v0 }
  0x87   :  { %3748 = vmatpush3.bf16.msra.mxu1 %v4473_v49 }
  0x88   :  { %3749 = vmatprep.subr.bf16.mxu1 %v5369_v0  ;;  %3679 = vmatpush3.bf16.msra.mxu0 %v4479_v54 }
  0x89   :  { %3680 = vmatprep.subr.bf16.mxu0 %v5369_v0 }
  0x8b   :  { %3751 = vmatpush3.bf16.msra.mxu1 %v4479_v54 }
  0x8c   :  { %3752 = vmatprep.subr.bf16.mxu1 %v5369_v0  ;;  %3682 = vmatpush3.bf16.msra.mxu0 %v4485_v59 }
  0x8d   :  { %3683 = vmatprep.subr.bf16.mxu0 %v5369_v0 }
  0x8f   :  { %3754 = vmatpush3.bf16.msra.mxu1 %v4485_v59 }
  0x90   :  { %3755 = vmatprep.subr.bf16.mxu1 %v5369_v0  ;;  %3685 = vmatpush3.bf16.msra.mxu0 %v4527_v16 }
  0x91   :  { %3686 = vmatprep.subr.bf16.mxu0 %v5369_v0 }
  0x93   :  { %3757 = vmatpush3.bf16.msra.mxu1 %v4527_v16 }
  0x94   :  { %3758 = vmatprep.subr.bf16.mxu1 %v5369_v0 }
 0x145   :  { %v564_v25 = vpop.f32.mrb[0].mxu0 }
 0x146   :  { %v3013_v26 = vpop.f32.mrb[1].mxu0 }
 0x147   :  { %v5366_v26 = vand.u32 4294901760, %v4622_v53 }
 0x149   :  { %v339_v31 = vpop.f32.mrb[0].mxu1 }
 0x14a   :  { %v4094_v33 = vadd.f32 %v2644_v27, %v339_v31  ;;  %v2992_v37 = vpop.f32.mrb[1].mxu1  ;;  %v4628_v27 = vld [vmem:[#allocation8 + $0x18] sm:$0xff]  ;;  %v4633_v31 = vsub.f32 %v4620_v52, %v5365_v56 }
 0x14b   :  { %v5368_v37 = vand.u32 4294901760, %v4626_v30 }
 0x14c   :  { %v4095_v41 = vadd.f32 %v4094_v33, %v564_v25  ;;  %5404 = vst [vmem:[#allocation16_spill] sm:$0xff] %v4633_v31  ;;  %v4638_v33 = vsub.f32 %v4622_v53, %v5366_v26  ;;  %v593_v31 = vlaneseq }
 0x14e   :  { %vm568_vm2 = vcmp.gt.f32.partialorder %v4095_v41, 0.0  ;;  %v569_v43 = vmul.f32 0.01, %v4095_v41  ;;  %5405 = vst [vmem:[#allocation17_spill] sm:$0xff] %v4638_v33 }
 0x150   :  { %v570_v45 = vsel %vm568_vm2, %v4095_v41, %v569_v43  ;;  %v5367_v41 = vand.u32 4294901760, %v4628_v27 }
 0x151   :  { %v571_v46 = vrot.slane %v570_v45, 4 }
 0x152   :  { %v4650_v56 = vsub.f32 %v4628_v27, %v5367_v41  ;;  %v4666_v41 = vsub.f32 %v4654_v22, %v5379_v19 }
 0x153   :  { %v572_v55 = vadd.f32 %v571_v46, %v570_v45  ;;  %v4645_v46 = vsub.f32 %v4626_v30, %v5368_v37 }
 0x154   :  { %5407 = vst [vmem:[#allocation19_spill] sm:$0xff] %v4650_v56  ;;  %5409 = vst [vmem:[#allocation21_spill] sm:$0xff] %v4666_v41 }
 0x155   :  { %v573_v25 = vrot.slane %v572_v55, 2  ;;  %5406 = vst [vmem:[#allocation18_spill] sm:$0xff] %v4645_v46 }
 0x157   :  { %v574_v43 = vadd.f32 %v573_v25, %v572_v55  ;;  %v4661_v25 = vsub.f32 %v4652_v42, %v5377_v20  ;;  %v594_v20 = vshrl.u32 %v593_v31, 7 }
 0x159   :  { %v575_v26 = vrot.slane %v574_v43, 1  ;;  %5408 = vst [vmem:[#allocation20_spill] sm:$0xff] %v4661_v25  ;;  %v95_v25 = vld [vmem:[%s5363_s5 + $0x4] sm:$0x1]  ;;  %v4671_v19 = vsub.s32 0, %v594_v20 }
 0x15b   :  { %v576_v55 = vadd.f32 %v575_v26, %v574_v43 }
 0x15d   :  { %v578_v37 = vmul.f32 0.125, %v576_v55 }
 0x15f   :  { %v579_v63 = vsub.f32 %v570_v45, %v578_v37 }
 0x161   :  { %v580_v62 = vmul.f32 %v579_v63, %v579_v63 }
 0x163   :  { %v581_v61 = vrot.slane %v580_v62, 4 }
 0x165   :  { %v582_v0 = vadd.f32 %v581_v61, %v580_v62  ;;  %v96_v61 = vld [vmem:[%s5363_s5 + $0x5] sm:$0x1] }
 0x167   :  { %v583_v1 = vrot.slane %v582_v0, 2 }
 0x169   :  { %v584_v56 = vadd.f32 %v583_v1, %v582_v0 }
 0x16b   :  { %v585_v46 = vrot.slane %v584_v56, 1 }
 0x16d   :  { %v586_v33 = vadd.f32 %v585_v46, %v584_v56 }
 0x16f   :  { %v587_v26 = vmul.f32 0.125, %v586_v33 }
 0x171   :  { %v588_v43 = vadd.f32 1e-05, %v587_v26 }
 0x173   :  { %4147 = vrsqrt.f32 %v588_v43 }
 0x17d   :  { %v4148_v55 = vpop.eup %4147 }
 0x17e   :  { %v590_v41 = vmul.f32 %v4148_v55, %v95_v25 }
 0x180   :  { %v591_v0 = vmul.f32 %v590_v41, %v578_v37  ;;  %v596_v1 = vrot.slane %v590_v41, %v4671_v19  ;;  %v5410_v37 = vmov 0.0   ;;  %v5411_v41 = vmov 0.0|0.0  }
 0x182   :  { %v592_v62 = vsub.f32 %v96_v61, %v591_v0  ;;  %v597_v63 = vmul.f32 %v596_v1, %v570_v45  ;;  %v5426_v61 = vld [vmem:[#allocation16_spill] sm:$0xff]  ;;  %v5427_v1 = vld [vmem:[#allocation17_spill] sm:$0xff] }
 0x183   :  { %v1381_v0 = vand.u32 4294901760, %v5426_v61 }
 0x184   :  { %v601_v56 = vrot.slane %v592_v62, %v4671_v19  ;;  %v1388_v62 = vand.u32 4294901760, %v5427_v1 }
 0x186   :  { %v602_v31 = vadd.f32 %v601_v56, %v597_v63 }
 0x188   :  { %v4678_v33 = vand.u32 4294901760, %v602_v31 }
 0x18a   :  { %v4681_v46 = vsub.f32 %v602_v31, %v4678_v33 }
 0x18c   :  { %v706_v20 = vand.u32 4294901760, %v4681_v46 }
 0x18e   :  { %3152 = vmatmul.mubr.f32.vlgmr.msra.gmra.mrb[2].mxu1 %v706_v20  ;;  %v707_v25 = vsub.f32 %v4681_v46, %v706_v20  ;;  %v5428_v20 = vld [vmem:[#allocation18_spill] sm:$0xff] }
 0x18f   :  { %3760 = vmatpush3.bf16.msra.mxu1 %v4538_v21  ;;  %3186 = vmatprep.mubr.msk.f32.mxu1 %vm4299_vm0, %v5410_v37  ;;  %v5412_v21 = vpack.c.bf16 %v4499_v3, %v4494_v2  ;;  %v5415_v2 = vpack.c.bf16 %v4513_v9, %v4511_v8  ;;  %v5421_v3 = vand.u32 4294901760, %v4622_v53  ;;  %v5424_v8 = vand.u32 4294901760, %v4652_v42 }
 0x190   :  { %3761 = vmatprep.subr.bf16.mxu1 %v5411_v41  ;;  %v708_v45 = vand.u32 4294901760, %v707_v25  ;;  %v5425_v9 = vand.u32 4294901760, %v4654_v22  ;;  %v1282_v22 = vld [vmem:[#allocation8 + $0x78] sm:$0xff]  ;;  %v1395_v25 = vand.u32 4294901760, %v5428_v20 }
 0x191   :  { %v1333_v55 = vand.u32 4294901760, %v1282_v22 }
 0x192   :  { %3047 = vmatmul.mubr.f32.vlgmr.msra.gmra.mrb[2].mxu0 %v708_v45  ;;  %v5429_v45 = vld [vmem:[#allocation19_spill] sm:$0xff] }
 0x193   :  { %3688 = vmatpush3.bf16.msra.mxu0 %v4549_v32  ;;  %3763 = vmatpush3.bf16.msra.mxu1 %v4545_v28  ;;  %v1276_v28 = vld [vmem:[#allocation8 + $0x48] sm:$0xff]  ;;  %v4843_v31 = vsub.f32 %v1282_v22, %v1333_v55 }
 0x194   :  { %3689 = vmatprep.subr.bf16.mxu0 %v5411_v41  ;;  %3764 = vmatprep.subr.bf16.mxu1 %v5411_v41 }
 0x195   :  { %3081 = vmatprep.mubr.msk.f32.mxu0 %vm4299_vm0, %v5410_v37 }
 0x197   :  { %3691 = vmatpush3.bf16.msra.mxu0 %v4553_v38  ;;  %3766 = vmatpush3.bf16.msra.mxu1 %v4555_v40  ;;  %v1315_v38 = vand.u32 4294901760, %v1276_v28 }
 0x198   :  { %3692 = vmatprep.subr.bf16.mxu0 %v5411_v41  ;;  %3767 = vmatprep.subr.bf16.mxu1 %v5411_v41 }
 0x199   :  { %v4825_v42 = vsub.f32 %v1276_v28, %v1315_v38 }
 0x19b   :  { %3694 = vmatpush3.bf16.msra.mxu0 %v4561_v48  ;;  %3769 = vmatpush3.bf16.msra.mxu1 %v4563_v50  ;;  %v1277_v48 = vld [vmem:[#allocation8 + $0x50] sm:$0xff]  ;;  %v1278_v50 = vld [vmem:[#allocation8 + $0x58] sm:$0xff] }
 0x19c   :  { %3695 = vmatprep.subr.bf16.mxu0 %v5411_v41  ;;  %3770 = vmatprep.subr.bf16.mxu1 %v5411_v41 }
 0x19f   :  { %3697 = vmatpush3.bf16.msra.mxu0 %v4569_v58  ;;  %3772 = vmatpush3.bf16.msra.mxu1 %v4571_v60  ;;  %v1318_v58 = vand.u32 4294901760, %v1277_v48  ;;  %v1321_v60 = vand.u32 4294901760, %v1278_v50 }
 0x1a0   :  { %3698 = vmatprep.subr.bf16.mxu0 %v5411_v41  ;;  %3773 = vmatprep.subr.bf16.mxu1 %v5411_v41 }
 0x1a1   :  { %v4829_v53 = vsub.f32 %v1278_v50, %v1321_v60 }
 0x1a3   :  { %3700 = vmatpush3.bf16.msra.mxu0 %v4577_v23  ;;  %3775 = vmatpush3.bf16.msra.mxu1 %v4579_v24  ;;  %v4817_v23 = vpack.c.bf16 %v1321_v60, %v1318_v58  ;;  %v1279_v24 = vld [vmem:[#allocation8 + $0x60] sm:$0xff]  ;;  %v5387_v60 = vand.u32 4294901760, %v4825_v42 }
 0x1a4   :  { %3701 = vmatprep.subr.bf16.mxu0 %v5411_v41  ;;  %3776 = vmatprep.subr.bf16.mxu1 %v5411_v41 }
 0x1a7   :  { %3703 = vmatpush3.bf16.msra.mxu0 %v4585_v35  ;;  %3778 = vmatpush3.bf16.msra.mxu1 %v4587_v36  ;;  %v1280_v35 = vld [vmem:[#allocation8 + $0x68] sm:$0xff]  ;;  %v1324_v36 = vand.u32 4294901760, %v1279_v24 }
 0x1a8   :  { %3704 = vmatprep.subr.bf16.mxu0 %v5411_v41  ;;  %3779 = vmatprep.subr.bf16.mxu1 %v5411_v41 }
 0x1ab   :  { %3706 = vmatpush3.bf16.msra.mxu0 %v4593_v47  ;;  %3781 = vmatpush3.bf16.msra.mxu1 %v4595_v51  ;;  %v1327_v47 = vand.u32 4294901760, %v1280_v35 }
 0x1ac   :  { %3707 = vmatprep.subr.bf16.mxu0 %v5411_v41  ;;  %3782 = vmatprep.subr.bf16.mxu1 %v5411_v41 }
 0x1ad   :  { %v4821_v51 = vpack.c.bf16 %v1327_v47, %v1324_v36  ;;  %v4834_v26 = vsub.f32 %v1280_v35, %v1327_v47 }
 0x1ae   :  { %3187 = vmatmul.mubr.f32.vlgmr.msra.gmra.mrb[2].mxu1 %v4678_v33 }
 0x1af   :  { %3709 = vmatpush3.bf16.msra.mxu0 %v4599_v57  ;;  %3784 = vmatpush3.bf16.msra.mxu1 %v4443_v29  ;;  %v5413_v29 = vpack.c.bf16 %v4505_v5, %v4502_v4  ;;  %v5422_v5 = vand.u32 4294901760, %v4626_v30  ;;  %v1281_v57 = vld [vmem:[#allocation8 + $0x70] sm:$0xff] }
 0x1b0   :  { %3710 = vmatprep.subr.bf16.mxu0 %v5411_v41  ;;  %3785 = vmatprep.subr.bf16.mxu1 %v5411_v41  ;;  %v1330_v43 = vand.u32 4294901760, %v1281_v57 }
 0x1b1   :  { %3221 = vmatprep.mubr.msk.f32.mxu1 %vm4299_vm0, %v5410_v37 }
 0x1b2   :  { %3082 = vmatmul.mubr.f32.vlgmr.msra.gmra.mrb[2].mxu0 %v4678_v33  ;;  %v4839_v63 = vpack.c.bf16 %v1333_v55, %v1330_v43  ;;  %v4841_v56 = vsub.f32 %v1281_v57, %v1330_v43  ;;  %v5385_v43 = vand.u32 4294901760, %v4829_v53 }
 0x1b3   :  { %3712 = vmatpush3.bf16.msra.mxu0 %v5412_v21  ;;  %3787 = vmatpush3.bf16.msra.mxu1 %v4455_v34  ;;  %v5414_v34 = vpack.c.bf16 %v4509_v7, %v4507_v6  ;;  %v5423_v6 = vand.u32 4294901760, %v4628_v27  ;;  %v4832_v27 = vsub.f32 %v1279_v24, %v1324_v36  ;;  %v1402_v21 = vand.u32 4294901760, %v5429_v45 }
 0x1b4   :  { %3713 = vmatprep.subr.bf16.mxu0 %v5411_v41  ;;  %3788 = vmatprep.subr.bf16.mxu1 %v5411_v41  ;;  %v1445_v36 = vsub.f32 %v4825_v42, %v5387_v60 }
 0x1b5   :  { %3116 = vmatprep.mubr.msk.f32.mxu0 %vm4299_vm0, %v5410_v37  ;;  %v4790_v7 = vpack.c.bf16 %v5423_v6, %v5422_v5  ;;  %v5431_v5 = vld [vmem:[#allocation21_spill] sm:$0xff] }
 0x1b6   :  { %v1416_v6 = vand.u32 4294901760, %v5431_v5  ;;  %v1446_v57 = vand.u32 4294901760, %v1445_v36 }
 0x1b7   :  { %3715 = vmatpush3.bf16.msra.mxu0 %v5413_v29  ;;  %3790 = vmatpush3.bf16.msra.mxu1 %v4461_v39  ;;  %v5416_v39 = vpack.c.bf16 %v4517_v11, %v4515_v10  ;;  %v4800_v10 = vpack.c.bf16 %v5425_v9, %v5424_v8  ;;  %v1273_v11 = vld [vmem:[#allocation8 + $0x30] sm:$0xff] }
 0x1b8   :  { %3716 = vmatprep.subr.bf16.mxu0 %v5411_v41  ;;  %3791 = vmatprep.subr.bf16.mxu1 %v5411_v41 }
 0x1bb   :  { %3718 = vmatpush3.bf16.msra.mxu0 %v5414_v34  ;;  %3793 = vmatpush3.bf16.msra.mxu1 %v4467_v44  ;;  %v5417_v44 = vpack.c.bf16 %v4521_v13, %v4519_v12  ;;  %v1274_v12 = vld [vmem:[#allocation8 + $0x38] sm:$0xff]  ;;  %v1306_v13 = vand.u32 4294901760, %v1273_v11 }
 0x1bc   :  { %3719 = vmatprep.subr.bf16.mxu0 %v5411_v41  ;;  %3794 = vmatprep.subr.bf16.mxu1 %v5411_v41 }
 0x1bf   :  { %3721 = vmatpush3.bf16.msra.mxu0 %v5415_v2  ;;  %3796 = vmatpush3.bf16.msra.mxu1 %v4473_v49  ;;  %v5418_v49 = vpack.c.bf16 %v4525_v15, %v4523_v14  ;;  %v1309_v14 = vand.u32 4294901760, %v1274_v12  ;;  %v1396_v2 = vsub.f32 %v5428_v20, %v1395_v25 }
 0x1c0   :  { %3722 = vmatprep.subr.bf16.mxu0 %v5411_v41  ;;  %3797 = vmatprep.subr.bf16.mxu1 %v5411_v41 }
 0x1c1   :  { %v4805_v15 = vpack.c.bf16 %v1309_v14, %v1306_v13 }
 0x1c3   :  { %3724 = vmatpush3.bf16.msra.mxu0 %v5416_v39  ;;  %3799 = vmatpush3.bf16.msra.mxu1 %v4479_v54  ;;  %v5419_v54 = vpack.c.bf16 %v4531_v18, %v4529_v17  ;;  %v4809_v17 = vsub.f32 %v1274_v12, %v1309_v14  ;;  %v1275_v18 = vld [vmem:[#allocation8 + $0x40] sm:$0xff]  ;;  %v1403_v39 = vsub.f32 %v5429_v45, %v1402_v21 }
 0x1c4   :  { %3725 = vmatprep.subr.bf16.mxu0 %v5411_v41  ;;  %3800 = vmatprep.subr.bf16.mxu1 %v5411_v41  ;;  %v1312_v32 = vand.u32 4294901760, %v1275_v18 }
 0x1c6   :  { %v4813_v40 = vpack.c.bf16 %v1315_v38, %v1312_v32  ;;  %v4823_v30 = vsub.f32 %v1275_v18, %v1312_v32  ;;  %v5389_v18 = vand.u32 4294901760, %v4809_v17 }
 0x1c7   :  { %3727 = vmatpush3.bf16.msra.mxu0 %v5417_v44  ;;  %3802 = vmatpush3.bf16.msra.mxu1 %v4485_v59  ;;  %v5420_v59 = vand.u32 4294901760, %v4620_v52  ;;  %v4827_v52 = vsub.f32 %v1277_v48, %v1318_v58 }
 0x1c8   :  { %3728 = vmatprep.subr.bf16.mxu0 %v5411_v41  ;;  %3803 = vmatprep.subr.bf16.mxu1 %v5411_v41  ;;  %v1431_v38 = vsub.f32 %v4809_v17, %v5389_v18  ;;  %v5388_v58 = vand.u32 4294901760, %v4823_v30 }
 0x1c9   :  { %v4779_v4 = vpack.c.bf16 %v5421_v3, %v5420_v59  ;;  %v5430_v59 = vld [vmem:[#allocation20_spill] sm:$0xff]  ;;  %v5386_v22 = vand.u32 4294901760, %v4827_v52 }
 0x1ca   :  { %v1409_v3 = vand.u32 4294901760, %v5430_v59  ;;  %v1432_v50 = vand.u32 4294901760, %v1431_v38  ;;  %v1438_v35 = vsub.f32 %v4823_v30, %v5388_v58 }
 0x1cb   :  { %3730 = vmatpush3.bf16.msra.mxu0 %v5418_v49  ;;  %3805 = vmatpush3.bf16.msra.mxu1 %v4527_v16  ;;  %v4807_v16 = vsub.f32 %v1273_v11, %v1306_v13  ;;  %v1397_v49 = vand.u32 4294901760, %v1396_v2  ;;  %v1417_v11 = vsub.f32 %v5431_v5, %v1416_v6  ;;  %v5384_v2 = vand.u32 4294901760, %v4832_v27 }
 0x1cc   :  { %3731 = vmatprep.subr.bf16.mxu0 %v5411_v41  ;;  %3950 = vmatprep.subr.bf16.mxu1 %v5411_v41  ;;  %v1410_v9 = vsub.f32 %v5430_v59, %v1409_v3  ;;  %v1439_v47 = vand.u32 4294901760, %v1438_v35 }
 0x1cd   :  { %v1418_v13 = vand.u32 4294901760, %v1417_v11  ;;  %v1423_v14 = vand.u32 4294901760, %v4807_v16 }
 0x1ce   :  { %3222 = vmatmul.mubr.f32.vlgmr.msra.gmra.mrb[2].mxu1 %v4678_v33  ;;  %v1382_v33 = vsub.f32 %v5426_v61, %v1381_v0  ;;  %v1411_v12 = vand.u32 4294901760, %v1410_v9  ;;  %v3843_v55 = vpack.c.bf16 %v1446_v57, %v1439_v47  ;;  %v3855_v57 = vpack.c.bf16 %v5427_v1, %v5426_v61 }
 0x1cf   :  { %3733 = vmatpush3.bf16.msra.mxu0 %v5419_v54  ;;  %3466 = vmatprep.mubr.msk.f32.mxu1 %vm4299_vm0, %v5410_v37  ;;  %v1404_v54 = vand.u32 4294901760, %v1403_v39  ;;  %v1424_v32 = vsub.f32 %v4807_v16, %v1423_v14  ;;  %v5383_v39 = vand.u32 4294901760, %v4834_v26  ;;  %v3909_v61 = vpack.c.bf16 %v1416_v6, %v1409_v3 }
 0x1d0   :  { %3806 = vmatprep.subr.bf16.mxu0 %v5411_v41  ;;  %v1383_v29 = vand.u32 4294901760, %v1382_v33  ;;  %v3837_v28 = vpack.c.bf16 %v1418_v13, %v1411_v12  ;;  %v1452_v33 = vsub.f32 %v4827_v52, %v5386_v22  ;;  %v5382_v13 = vand.u32 4294901760, %v4841_v56 }
 0x1d1   :  { %v4865_v8 = vpack.c.bf16 %v1404_v54, %v1397_v49  ;;  %v1425_v48 = vand.u32 4294901760, %v1424_v32  ;;  %v1466_v54 = vsub.f32 %v4832_v27, %v5384_v2  ;;  %v1473_v9 = vsub.f32 %v4834_v26, %v5383_v39 }
 0x1d2   :  { %3117 = vmatmul.mubr.f32.vlgmr.msra.gmra.mrb[2].mxu0 %v4681_v46  ;;  %v1389_v46 = vsub.f32 %v5427_v1, %v1388_v62  ;;  %v5381_v32 = vand.u32 4294901760, %v4843_v31 }
 0x1d3   :  { %3808 = vmatpush3.bf16.msra.mxu0 %v4779_v4  ;;  %3256 = vmatprep.mubr.msk.f32.mxu0 %vm4299_vm0, %v5410_v37  ;;  %v3840_v24 = vpack.c.bf16 %v1432_v50, %v1425_v48  ;;  %v1467_v11 = vand.u32 4294901760, %v1466_v54  ;;  %v1474_v12 = vand.u32 4294901760, %v1473_v9  ;;  %v1480_v48 = vsub.f32 %v4841_v56, %v5382_v13 }
 0x1d4   :  { %3809 = vmatprep.subr.bf16.mxu0 %v5411_v41  ;;  %v1390_v34 = vand.u32 4294901760, %v1389_v46  ;;  %v1459_v46 = vsub.f32 %v4829_v53, %v5385_v43  ;;  %v1487_v50 = vsub.f32 %v4843_v31, %v5381_v32  ;;  %v3870_v54 = vpack.c.bf16 %v4829_v53, %v4827_v52 }
 0x1d5   :  { %v3849_v38 = vpack.c.bf16 %v1474_v12, %v1467_v11  ;;  %v1481_v35 = vand.u32 4294901760, %v1480_v48  ;;  %v3873_v9 = vpack.c.bf16 %v4834_v26, %v4832_v27  ;;  %v3876_v11 = vpack.c.bf16 %v4843_v31, %v4841_v56 }
 0x1d6   :  { %v4861_v44 = vpack.c.bf16 %v1390_v34, %v1383_v29  ;;  %v1453_v29 = vand.u32 4294901760, %v1452_v33  ;;  %v1460_v34 = vand.u32 4294901760, %v1459_v46  ;;  %v1488_v36 = vand.u32 4294901760, %v1487_v50  ;;  %v2645_v50 = vld [vmem:[%s5363_s5 + $0x1] ss:$0 sm:$0xff] }
 0x1d7   :  { %3811 = vmatpush3.bf16.msra.mxu0 %v4790_v7  ;;  %v3858_v33 = vpack.c.bf16 %v5429_v45, %v5428_v20  ;;  %v3861_v46 = vpack.c.bf16 %v5431_v5, %v5430_v59  ;;  %v5434_v20 = vand.u32 4294901760, %v4825_v42  ;;  %v5435_v45 = vand.u32 4294901760, %v4827_v52 }
 0x1d8   :  { %3812 = vmatprep.subr.bf16.mxu0 %v5411_v41  ;;  %v3846_v49 = vpack.c.bf16 %v1460_v34, %v1453_v29  ;;  %v3852_v47 = vpack.c.bf16 %v1488_v36, %v1481_v35  ;;  %v3864_v29 = vpack.c.bf16 %v4809_v17, %v4807_v16  ;;  %v3867_v34 = vpack.c.bf16 %v4825_v42, %v4823_v30 }
 0x1d9   :  { %v5437_v16 = vand.u32 4294901760, %v4832_v27  ;;  %v5440_v42 = vand.u32 4294901760, %v4843_v31 }
 0x1db   :  { %3814 = vmatpush3.bf16.msra.mxu0 %v4800_v10 }
 0x1dc   :  { %3815 = vmatprep.subr.bf16.mxu0 %v5411_v41 }
 0x1df   :  { %3817 = vmatpush3.bf16.msra.mxu0 %v4805_v15 }
 0x1e0   :  { %3818 = vmatprep.subr.bf16.mxu0 %v5411_v41 }
 0x1e3   :  { %3820 = vmatpush3.bf16.msra.mxu0 %v4813_v40 }
 0x1e4   :  { %3821 = vmatprep.subr.bf16.mxu0 %v5411_v41 }
 0x1e7   :  { %3823 = vmatpush3.bf16.msra.mxu0 %v4817_v23 }
 0x1e8   :  { %3824 = vmatprep.subr.bf16.mxu0 %v5411_v41 }
 0x1eb   :  { %3826 = vmatpush3.bf16.msra.mxu0 %v4821_v51 }
 0x1ec   :  { %3827 = vmatprep.subr.bf16.mxu0 %v5411_v41 }
 0x1ef   :  { %3829 = vmatpush3.bf16.msra.mxu0 %v4839_v63 }
 0x1f0   :  { %3830 = vmatprep.subr.bf16.mxu0 %v5411_v41 }
 0x2a1   :  { %v1260_v12 = vpop.f32.mrb[2].mxu1 }
 0x2a2   :  { %v3223_v48 = vpop.f32.mrb[3].mxu1 }
 0x2a5   :  { %v965_v35 = vpop.f32.mrb[2].mxu0 }
 0x2a6   :  { %v4096_v36 = vadd.f32 %v2645_v50, %v965_v35  ;;  %v3118_v32 = vpop.f32.mrb[3].mxu0  ;;  %v1977_v50 = vld [vmem:[#allocation10 + $0x78] sm:$0xff] }
 0x2a8   :  { %v4097_v13 = vadd.f32 %v4096_v36, %v1260_v12 }
 0x2aa   :  { %vm1264_vm3 = vcmp.gt.f32.partialorder %v4097_v13, 0.0  ;;  %v1265_v39 = vmul.f32 0.01, %v4097_v13 }
 0x2ac   :  { %v1266_v2 = vsel %vm1264_vm3, %v4097_v13, %v1265_v39  ;;  %v1972_v39 = vld [vmem:[#allocation10 + $0x50] sm:$0xff] }
 0x2ad   :  { %v4932_v43 = vand.u32 4294901760, %v1266_v2  ;;  %v2013_v13 = vand.u32 4294901760, %v1972_v39 }
 0x2af   :  { %v1369_v22 = vsub.f32 %v1266_v2, %v4932_v43 }
 0x2b1   :  { %v1370_v60 = vand.u32 4294901760, %v1369_v22 }
 0x2b3   :  { %v1371_v58 = vsub.f32 %v1369_v22, %v1370_v60 }
 0x2b5   :  { %v1372_v18 = vand.u32 4294901760, %v1371_v58 }
 0x2b7   :  { %3257 = vmatmul.mubr.f32.vlgmr.msra.gmra.mrb[4].mxu0 %v1372_v18  ;;  %v1969_v18 = vld [vmem:[#allocation10 + $0x38] sm:$0xff] }
 0x2b8   :  { %3832 = vmatpush3.bf16.msra.mxu0 %v4861_v44  ;;  %3291 = vmatprep.mubr.msk.f32.mxu0 %vm4299_vm0, %v5410_v37  ;;  %v3903_v44 = vpack.c.bf16 %v1388_v62, %v1381_v0  ;;  %v5432_v0 = vand.u32 4294901760, %v4809_v17  ;;  %v5433_v62 = vand.u32 4294901760, %v4823_v30  ;;  %v5438_v17 = vand.u32 4294901760, %v4834_v26  ;;  %v1966_v26 = vld [vmem:[#allocation10 + $0x20] sm:$0xff] }
 0x2b9   :  { %3833 = vmatprep.subr.bf16.mxu0 %v5411_v41  ;;  %v5439_v30 = vand.u32 4294901760, %v4841_v56  ;;  %v1995_v56 = vand.u32 4294901760, %v1966_v26  ;;  %v2004_v58 = vand.u32 4294901760, %v1969_v18 }
 0x2ba   :  { %v3912_v1 = vpack.c.bf16 %v5432_v0, %v1423_v14  ;;  %v3921_v3 = vpack.c.bf16 %v5438_v17, %v5437_v16  ;;  %v1968_v14 = vld [vmem:[#allocation10 + $0x30] sm:$0xff] }
 0x2bb   :  { %v3924_v5 = vpack.c.bf16 %v5440_v42, %v5439_v30  ;;  %v5073_v48 = vsub.f32 %v1969_v18, %v2004_v58 }
 0x2bc   :  { %3835 = vmatpush3.bf16.msra.mxu0 %v4865_v8  ;;  %v3906_v8 = vpack.c.bf16 %v1402_v21, %v1395_v25  ;;  %v3915_v25 = vpack.c.bf16 %v5434_v20, %v5433_v62  ;;  %v5436_v21 = vand.u32 4294901760, %v4829_v53  ;;  %v1965_v53 = vld [vmem:[#allocation10 + $0x18] sm:$0xff]  ;;  %v2028_v62 = vand.u32 4294901760, %v1977_v50 }
 0x2bd   :  { %3836 = vmatprep.subr.bf16.mxu0 %v5411_v41  ;;  %v1992_v27 = vand.u32 4294901760, %v1965_v53 }
 0x2be   :  { %v3918_v59 = vpack.c.bf16 %v5436_v21, %v5435_v45 }
 0x2c0   :  { %3838 = vmatpush3.bf16.msra.mxu0 %v3837_v28  ;;  %v2001_v28 = vand.u32 4294901760, %v1968_v14 }
 0x2c1   :  { %3839 = vmatprep.subr.bf16.mxu0 %v5411_v41 }
 0x2c2   :  { %v5071_v12 = vsub.f32 %v1968_v14, %v2001_v28 }
 0x2c4   :  { %3841 = vmatpush3.bf16.msra.mxu0 %v3840_v24  ;;  %v1970_v24 = vld [vmem:[#allocation10 + $0x40] sm:$0xff] }
 0x2c5   :  { %3842 = vmatprep.subr.bf16.mxu0 %v5411_v41 }
 0x2c8   :  { %3844 = vmatpush3.bf16.msra.mxu0 %v3843_v55 }
 0x2c9   :  { %3845 = vmatprep.subr.bf16.mxu0 %v5411_v41 }
 0x2cc   :  { %3847 = vmatpush3.bf16.msra.mxu0 %v3846_v49  ;;  %v1973_v49 = vld [vmem:[#allocation10 + $0x58] sm:$0xff] }
 0x2cd   :  { %3848 = vmatprep.subr.bf16.mxu0 %v5411_v41  ;;  %v2016_v32 = vand.u32 4294901760, %v1973_v49 }
 0x2d0   :  { %3850 = vmatpush3.bf16.msra.mxu0 %v3849_v38  ;;  %v5057_v38 = vpack.c.bf16 %v2016_v32, %v2013_v13 }
 0x2d1   :  { %3851 = vmatprep.subr.bf16.mxu0 %v5411_v41 }
 0x2d4   :  { %3853 = vmatpush3.bf16.msra.mxu0 %v3852_v47 }
 0x2d5   :  { %3854 = vmatprep.subr.bf16.mxu0 %v5411_v41 }
 0x2d7   :  { %3292 = vmatmul.mubr.f32.vlgmr.msra.gmra.mrb[4].mxu0 %v4932_v43 }
 0x2d8   :  { %3856 = vmatpush3.bf16.msra.mxu0 %v3855_v57  ;;  %3326 = vmatprep.mubr.msk.f32.mxu0 %vm4299_vm0, %v5410_v37 }
 0x2d9   :  { %3857 = vmatprep.subr.bf16.mxu0 %v5411_v41 }
 0x2dc   :  { %3859 = vmatpush3.bf16.msra.mxu0 %v3858_v33 }
 0x2dd   :  { %3860 = vmatprep.subr.bf16.mxu0 %v5411_v41 }
 0x2e0   :  { %3862 = vmatpush3.bf16.msra.mxu0 %v3861_v46  ;;  %v5065_v46 = vsub.f32 %v1965_v53, %v1992_v27 }
 0x2e1   :  { %3863 = vmatprep.subr.bf16.mxu0 %v5411_v41 }
 0x2e4   :  { %3865 = vmatpush3.bf16.msra.mxu0 %v3864_v29  ;;  %v1974_v29 = vld [vmem:[#allocation10 + $0x60] sm:$0xff] }
 0x2e5   :  { %3866 = vmatprep.subr.bf16.mxu0 %v5411_v41 }
 0x2e8   :  { %3868 = vmatpush3.bf16.msra.mxu0 %v3867_v34  ;;  %v1975_v34 = vld [vmem:[#allocation10 + $0x68] sm:$0xff] }
 0x2e9   :  { %3869 = vmatprep.subr.bf16.mxu0 %v5411_v41  ;;  %v2022_v0 = vand.u32 4294901760, %v1975_v34 }
 0x2eb   :  { %v5089_v45 = vsub.f32 %v1975_v34, %v2022_v0 }
 0x2ec   :  { %3871 = vmatpush3.bf16.msra.mxu0 %v3870_v54  ;;  %v1976_v54 = vld [vmem:[#allocation10 + $0x70] sm:$0xff] }
 0x2ed   :  { %3872 = vmatprep.subr.bf16.mxu0 %v5411_v41 }
 0x2f0   :  { %3874 = vmatpush3.bf16.msra.mxu0 %v3873_v9  ;;  %v5067_v9 = vsub.f32 %v1966_v26, %v1995_v56 }
 0x2f1   :  { %3875 = vmatprep.subr.bf16.mxu0 %v5411_v41 }
 0x2f2   :  { %v5401_v26 = vand.u32 4294901760, %v5067_v9 }
 0x2f4   :  { %3877 = vmatpush3.bf16.msra.mxu0 %v3876_v11 }
 0x2f5   :  { %3878 = vmatprep.subr.bf16.mxu0 %v5411_v41 }
 0x2f7   :  { %3327 = vmatmul.mubr.f32.vlgmr.msra.gmra.mrb[4].mxu0 %v1369_v22  ;;  %v1971_v22 = vld [vmem:[#allocation10 + $0x48] sm:$0xff] }
 0x2f8   :  { %3880 = vmatpush3.bf16.msra.mxu0 %v4779_v4  ;;  %3361 = vmatprep.mubr.msk.f32.mxu0 %vm4299_vm0, %v5410_v37  ;;  %v2010_v55 = vand.u32 4294901760, %v1971_v22 }
 0x2f9   :  { %3881 = vmatprep.subr.bf16.mxu0 %v5411_v41 }
 0x2fa   :  { %v5078_v36 = vsub.f32 %v1971_v22, %v2010_v55 }
 0x2fc   :  { %3883 = vmatpush3.bf16.msra.mxu0 %v4790_v7 }
 0x2fd   :  { %3884 = vmatprep.subr.bf16.mxu0 %v5411_v41 }
 0x300   :  { %3886 = vmatpush3.bf16.msra.mxu0 %v4800_v10 }
 0x301   :  { %3887 = vmatprep.subr.bf16.mxu0 %v5411_v41 }
 0x304   :  { %3889 = vmatpush3.bf16.msra.mxu0 %v4805_v15 }
 0x305   :  { %3890 = vmatprep.subr.bf16.mxu0 %v5411_v41 }
 0x308   :  { %3892 = vmatpush3.bf16.msra.mxu0 %v4813_v40 }
 0x309   :  { %3893 = vmatprep.subr.bf16.mxu0 %v5411_v41 }
 0x30c   :  { %3895 = vmatpush3.bf16.msra.mxu0 %v4817_v23 }
 0x30d   :  { %3896 = vmatprep.subr.bf16.mxu0 %v5411_v41 }
 0x310   :  { %3898 = vmatpush3.bf16.msra.mxu0 %v4821_v51 }
 0x311   :  { %3899 = vmatprep.subr.bf16.mxu0 %v5411_v41 }
 0x314   :  { %3901 = vmatpush3.bf16.msra.mxu0 %v4839_v63 }
 0x315   :  { %3902 = vmatprep.subr.bf16.mxu0 %v5411_v41 }
 0x317   :  { %3362 = vmatmul.mubr.f32.vlgmr.msra.gmra.mrb[4].mxu0 %v1370_v60  ;;  %v5049_v60 = vpack.c.bf16 %v2004_v58, %v2001_v28  ;;  %v5399_v58 = vand.u32 4294901760, %v5071_v12 }
 0x318   :  { %3904 = vmatpush3.bf16.msra.mxu0 %v3903_v44  ;;  %3396 = vmatprep.mubr.msk.f32.mxu0 %vm4299_vm0, %v5410_v37  ;;  %v5080_v44 = vsub.f32 %v1972_v39, %v2013_v13 }
 0x319   :  { %3905 = vmatprep.subr.bf16.mxu0 %v5411_v41 }
 0x31c   :  { %3907 = vmatpush3.bf16.msra.mxu0 %v3906_v8  ;;  %v5082_v8 = vsub.f32 %v1973_v49, %v2016_v32  ;;  %v5396_v32 = vand.u32 4294901760, %v5078_v36 }
 0x31d   :  { %3908 = vmatprep.subr.bf16.mxu0 %v5411_v41 }
 0x320   :  { %3910 = vmatpush3.bf16.msra.mxu0 %v3909_v61  ;;  %v2019_v61 = vand.u32 4294901760, %v1974_v29 }
 0x321   :  { %3911 = vmatprep.subr.bf16.mxu0 %v5411_v41 }
 0x322   :  { %v5085_v20 = vpack.c.bf16 %v2022_v0, %v2019_v61  ;;  %v5395_v0 = vand.u32 4294901760, %v5080_v44 }
 0x324   :  { %3913 = vmatpush3.bf16.msra.mxu0 %v3912_v1  ;;  %v2025_v1 = vand.u32 4294901760, %v1976_v54 }
 0x325   :  { %3914 = vmatprep.subr.bf16.mxu0 %v5411_v41 }
 0x326   :  { %v5091_v21 = vsub.f32 %v1976_v54, %v2025_v1  ;;  %v2140_v54 = vsub.f32 %v5078_v36, %v5396_v32 }
 0x328   :  { %3916 = vmatpush3.bf16.msra.mxu0 %v3915_v25  ;;  %v5087_v25 = vsub.f32 %v1974_v29, %v2019_v61  ;;  %v2141_v61 = vand.u32 4294901760, %v2140_v54 }
 0x329   :  { %3917 = vmatprep.subr.bf16.mxu0 %v5411_v41 }
 0x32c   :  { %3919 = vmatpush3.bf16.msra.mxu0 %v3918_v59  ;;  %v5093_v59 = vsub.f32 %v1977_v50, %v2028_v62 }
 0x32d   :  { %3920 = vmatprep.subr.bf16.mxu0 %v5411_v41 }
 0x330   :  { %3922 = vmatpush3.bf16.msra.mxu0 %v3921_v3  ;;  %v5098_v3 = vpack.c.bf16 %v2028_v62, %v2025_v1  ;;  %v5394_v1 = vand.u32 4294901760, %v5082_v8 }
 0x331   :  { %3923 = vmatprep.subr.bf16.mxu0 %v5411_v41 }
 0x334   :  { %3925 = vmatpush3.bf16.msra.mxu0 %v3924_v5 }
 0x335   :  { %3926 = vmatprep.subr.bf16.mxu0 %v5411_v41 }
 0x337   :  { %3397 = vmatmul.mubr.f32.vlgmr.msra.gmra.mrb[4].mxu0 %v4932_v43 }
 0x338   :  { %3928 = vmatpush3.bf16.msra.mxu0 %v4779_v4  ;;  %3431 = vmatprep.mubr.msk.f32.mxu0 %vm4299_vm0, %v5410_v37  ;;  %v1962_v4 = vld [vmem:[#allocation10] sm:$0xff] }
 0x339   :  { %3929 = vmatprep.subr.bf16.mxu0 %v5411_v41 }
 0x33c   :  { %3931 = vmatpush3.bf16.msra.mxu0 %v4790_v7  ;;  %v1963_v7 = vld [vmem:[#allocation10 + $0x8] sm:$0xff] }
 0x33d   :  { %3932 = vmatprep.subr.bf16.mxu0 %v5411_v41 }
 0x340   :  { %3934 = vmatpush3.bf16.msra.mxu0 %v4800_v10  ;;  %v1983_v10 = vand.u32 4294901760, %v1962_v4 }
 0x341   :  { %3935 = vmatprep.subr.bf16.mxu0 %v5411_v41 }
 0x342   :  { %v5059_v47 = vsub.f32 %v1962_v4, %v1983_v10 }
 0x344   :  { %3937 = vmatpush3.bf16.msra.mxu0 %v4805_v15  ;;  %v1986_v15 = vand.u32 4294901760, %v1963_v7  ;;  %v2076_v16 = vand.u32 4294901760, %v5059_v47 }
 0x345   :  { %3938 = vmatprep.subr.bf16.mxu0 %v5411_v41 }
 0x346   :  { %v5037_v52 = vpack.c.bf16 %v1986_v15, %v1983_v10  ;;  %v5061_v57 = vsub.f32 %v1963_v7, %v1986_v15  ;;  %v2077_v30 = vsub.f32 %v5059_v47, %v2076_v16  ;;  %v5402_v10 = vand.u32 4294901760, %v5065_v46 }
 0x348   :  { %3940 = vmatpush3.bf16.msra.mxu0 %v4813_v40  ;;  %v1964_v40 = vld [vmem:[#allocation10 + $0x10] sm:$0xff]  ;;  %3952 = vmatpush3.bf16.msra.mxu1 %v5037_v52  ;;  %v2083_v17 = vand.u32 4294901760, %v5061_v57  ;;  %v2078_v5 = vand.u32 4294901760, %v2077_v30  ;;  %v2098_v53 = vsub.f32 %v5065_v46, %v5402_v10  ;;  %v2147_v30 = vsub.f32 %v5080_v44, %v5395_v0 }
 0x349   :  { %3941 = vmatprep.subr.bf16.mxu0 %v5411_v41  ;;  %3953 = vmatprep.subr.bf16.mxu1 %v5411_v41 }
 0x34a   :  { %v2084_v42 = vsub.f32 %v5061_v57, %v2083_v17 }
 0x34c   :  { %3943 = vmatpush3.bf16.msra.mxu0 %v4817_v23  ;;  %v1989_v23 = vand.u32 4294901760, %v1964_v40  ;;  %v2085_v4 = vand.u32 4294901760, %v2084_v42  ;;  %v2154_v42 = vsub.f32 %v5082_v8, %v5394_v1 }
 0x34d   :  { %3944 = vmatprep.subr.bf16.mxu0 %v5411_v41 }
 0x34e   :  { %v5063_v33 = vsub.f32 %v1964_v40, %v1989_v23  ;;  %v5111_v15 = vpack.c.bf16 %v2085_v4, %v2078_v5  ;;  %v2148_v5 = vand.u32 4294901760, %v2147_v30  ;;  %v2155_v4 = vand.u32 4294901760, %v2154_v42 }
 0x350   :  { %3946 = vmatpush3.bf16.msra.mxu0 %v4821_v51  ;;  %v5041_v51 = vpack.c.bf16 %v1992_v27, %v1989_v23  ;;  %v5403_v7 = vand.u32 4294901760, %v5063_v33  ;;  %v2099_v27 = vand.u32 4294901760, %v2098_v53  ;;  %v5392_v53 = vand.u32 4294901760, %v5089_v45 }
 0x351   :  { %3947 = vmatprep.subr.bf16.mxu0 %v5411_v41  ;;  %v4002_v30 = vpack.c.bf16 %v5065_v46, %v5063_v33 }
 0x352   :  { %3955 = vmatpush3.bf16.msra.mxu1 %v5041_v51  ;;  %v2091_v40 = vsub.f32 %v5063_v33, %v5403_v7 }
 0x353   :  { %3956 = vmatprep.subr.bf16.mxu1 %v5411_v41 }
 0x354   :  { %3949 = vmatpush3.bf16.msra.mxu0 %v4839_v63  ;;  %v1967_v63 = vld [vmem:[#allocation10 + $0x28] sm:$0xff]  ;;  %v2092_v23 = vand.u32 4294901760, %v2091_v40  ;;  %v5393_v40 = vand.u32 4294901760, %v5087_v25 }
 0x355   :  { %v1998_v31 = vand.u32 4294901760, %v1967_v63 }
 0x357   :  { %3432 = vmatmul.mubr.f32.vlgmr.msra.gmra.mrb[4].mxu0 %v4932_v43  ;;  %v5045_v6 = vpack.c.bf16 %v1998_v31, %v1995_v56  ;;  %v2007_v43 = vand.u32 4294901760, %v1970_v24  ;;  %v5069_v11 = vsub.f32 %v1967_v63, %v1998_v31  ;;  %v5121_v56 = vpack.c.bf16 %v2099_v27, %v2092_v23 }
 0x358   :  { %v2105_v31 = vsub.f32 %v5067_v9, %v5401_v26  ;;  %v5161_v23 = vpack.c.bf16 %v2155_v4, %v2148_v5  ;;  %v2161_v27 = vsub.f32 %v5087_v25, %v5393_v40  ;;  %v4008_v5 = vpack.c.bf16 %v5073_v48, %v5071_v12 }
 0x359   :  { %3958 = vmatpush3.bf16.msra.mxu1 %v5045_v6  ;;  %v5053_v2 = vpack.c.bf16 %v2010_v55, %v2007_v43  ;;  %v5076_v35 = vsub.f32 %v1970_v24, %v2007_v43  ;;  %v5400_v63 = vand.u32 4294901760, %v5069_v11  ;;  %v5398_v24 = vand.u32 4294901760, %v5073_v48 }
 0x35a   :  { %3959 = vmatprep.subr.bf16.mxu1 %v5411_v41  ;;  %v2106_v18 = vand.u32 4294901760, %v2105_v31  ;;  %v2119_v43 = vsub.f32 %v5071_v12, %v5399_v58  ;;  %v2168_v31 = vsub.f32 %v5089_v45, %v5392_v53  ;;  %v4005_v42 = vpack.c.bf16 %v5069_v11, %v5067_v9 }
 0x35b   :  { %v2112_v14 = vsub.f32 %v5069_v11, %v5400_v63  ;;  %v2126_v55 = vsub.f32 %v5073_v48, %v5398_v24  ;;  %v5397_v13 = vand.u32 4294901760, %v5076_v35  ;;  %v4011_v4 = vpack.c.bf16 %v5078_v36, %v5076_v35 }
 0x35c   :  { %v2120_v39 = vand.u32 4294901760, %v2119_v43  ;;  %v5390_v43 = vand.u32 4294901760, %v5093_v59 }
 0x35d   :  { %3961 = vmatpush3.bf16.msra.mxu1 %v5049_v60  ;;  %v2113_v28 = vand.u32 4294901760, %v2112_v14  ;;  %v2127_v49 = vand.u32 4294901760, %v2126_v55  ;;  %v2133_v34 = vsub.f32 %v5076_v35, %v5397_v13  ;;  %v2162_v14 = vand.u32 4294901760, %v2161_v27 }
 0x35e   :  { %3962 = vmatprep.subr.bf16.mxu1 %v5411_v41  ;;  %v4014_v27 = vpack.c.bf16 %v5082_v8, %v5080_v44 }
 0x35f   :  { %v5131_v22 = vpack.c.bf16 %v2113_v28, %v2106_v18  ;;  %v5141_v29 = vpack.c.bf16 %v2127_v49, %v2120_v39  ;;  %v2134_v50 = vand.u32 4294901760, %v2133_v34  ;;  %v2169_v18 = vand.u32 4294901760, %v2168_v31 }
 0x360   :  { %v5391_v28 = vand.u32 4294901760, %v5091_v21  ;;  %v2182_v49 = vsub.f32 %v5093_v59, %v5390_v43  ;;  %v4017_v31 = vpack.c.bf16 %v5089_v45, %v5087_v25 }
 0x361   :  { %3964 = vmatpush3.bf16.msra.mxu1 %v5053_v2  ;;  %v5151_v62 = vpack.c.bf16 %v2141_v61, %v2134_v50  ;;  %v5171_v55 = vpack.c.bf16 %v2169_v18, %v2162_v14  ;;  %v3999_v61 = vpack.c.bf16 %v5061_v57, %v5059_v47  ;;  %v2646_v14 = vld [vmem:[%s5363_s5 + $0x2] ss:$0 sm:$0xff]  ;;  %v5443_v47 = vand.u32 4294901760, %v5067_v9 }
 0x362   :  { %3965 = vmatprep.subr.bf16.mxu1 %v5411_v41  ;;  %v2175_v39 = vsub.f32 %v5091_v21, %v5391_v28  ;;  %v2183_v54 = vand.u32 4294901760, %v2182_v49  ;;  %v5444_v57 = vand.u32 4294901760, %v5069_v11  ;;  %v5449_v9 = vand.u32 4294901760, %v5080_v44 }
 0x363   :  { %v5450_v11 = vand.u32 4294901760, %v5082_v8 }
 0x364   :  { %v2176_v34 = vand.u32 4294901760, %v2175_v39 }
 0x365   :  { %3967 = vmatpush3.bf16.msra.mxu1 %v5057_v38 }
 0x366   :  { %3968 = vmatprep.subr.bf16.mxu1 %v5411_v41  ;;  %v5179_v50 = vpack.c.bf16 %v2183_v54, %v2176_v34  ;;  %v4020_v34 = vpack.c.bf16 %v5093_v59, %v5091_v21 }
 0x369   :  { %3970 = vmatpush3.bf16.msra.mxu1 %v5085_v20 }
 0x36a   :  { %3971 = vmatprep.subr.bf16.mxu1 %v5411_v41 }
 0x36d   :  { %3973 = vmatpush3.bf16.msra.mxu1 %v5098_v3 }
 0x36e   :  { %3974 = vmatprep.subr.bf16.mxu1 %v5411_v41 }
 0x42a   :  { %v1924_v18 = vpop.f32.mrb[4].mxu0 }
 0x42b   :  { %v4098_v39 = vadd.f32 %v2646_v14, %v1924_v18  ;;  %v3433_v49 = vpop.f32.mrb[5].mxu0 }
 0x42c   :  { %v97_v49 = vld [vmem:[%s5363_s5 + $0x6] sm:$0x1] }
 0x42d   :  { %v1928_v54 = vrot.slane %v4098_v39, 4 }
 0x42f   :  { %v1929_v43 = vadd.f32 %v4098_v39, %v1928_v54 }
 0x431   :  { %v1930_v28 = vrot.slane %v1929_v43, 2 }
 0x433   :  { %v1931_v53 = vadd.f32 %v1930_v28, %v1929_v43 }
 0x435   :  { %v1932_v40 = vrot.slane %v1931_v53, 1 }
 0x437   :  { %v1933_v1 = vadd.f32 %v1932_v40, %v1931_v53 }
 0x439   :  { %v1934_v0 = vmul.f32 0.125, %v1933_v1  ;;  %v98_v1 = vld [vmem:[%s5363_s5 + $0x7] sm:$0x1] }
 0x43b   :  { %v1935_v32 = vsub.f32 %v4098_v39, %v1934_v0 }
 0x43d   :  { %v1936_v13 = vmul.f32 %v1935_v32, %v1935_v32 }
 0x43f   :  { %v1937_v24 = vrot.slane %v1936_v13, 4 }
 0x441   :  { %v1938_v58 = vadd.f32 %v1937_v24, %v1936_v13 }
 0x443   :  { %v1939_v63 = vrot.slane %v1938_v58, 2 }
 0x445   :  { %v1940_v26 = vadd.f32 %v1939_v63, %v1938_v58 }
 0x447   :  { %v1941_v10 = vrot.slane %v1940_v26, 1 }
 0x449   :  { %v1942_v7 = vadd.f32 %v1941_v10, %v1940_v26 }
 0x44b   :  { %v1943_v14 = vmul.f32 0.125, %v1942_v7 }
 0x44d   :  { %v1944_v18 = vadd.f32 1e-05, %v1943_v14 }
 0x44f   :  { %4149 = vrsqrt.f32 %v1944_v18 }
 0x459   :  { %v4150_v54 = vpop.eup %4149 }
 0x45a   :  { %v1946_v28 = vmul.f32 %v4150_v54, %v97_v49 }
 0x45c   :  { %v1947_v32 = vmul.f32 %v1946_v28, %v1934_v0  ;;  %v1952_v24 = vrot.slane %v1946_v28, %v4671_v19  ;;  %v5448_v0 = vand.u32 4294901760, %v5078_v36  ;;  %v5454_v36 = vand.u32 4294901760, %v5093_v59 }
 0x45e   :  { %v1948_v13 = vsub.f32 %v98_v1, %v1947_v32  ;;  %v1953_v63 = vmul.f32 %v4098_v39, %v1952_v24 }
 0x460   :  { %v1957_v10 = vrot.slane %v1948_v13, %v4671_v19  ;;  %v4047_v19 = vpack.c.bf16 %v2083_v17, %v2076_v16  ;;  %v4053_v16 = vpack.c.bf16 %v5444_v57, %v5443_v47  ;;  %v5445_v17 = vand.u32 4294901760, %v5071_v12 }
 0x461   :  { %v5451_v12 = vand.u32 4294901760, %v5087_v25 }
 0x462   :  { %v1958_v7 = vadd.f32 %v1957_v10, %v1953_v63 }
 0x464   :  { %vm1959_vm4 = vcmp.gt.f32.partialorder %v1958_v7, 0.0  ;;  %v1960_v26 = vmul.f32 0.01, %v1958_v7 }
 0x466   :  { %v1961_v58 = vsel %vm1959_vm4, %v1958_v7, %v1960_v26 }
 0x467   :  { %v5208_v40 = vand.u32 4294901760, %v1961_v58 }
 0x469   :  { %v2064_v53 = vsub.f32 %v1961_v58, %v5208_v40 }
 0x46b   :  { %v2065_v43 = vand.u32 4294901760, %v2064_v53 }
 0x46d   :  { %v2066_v14 = vsub.f32 %v2064_v53, %v2065_v43 }
 0x46f   :  { %v2067_v18 = vand.u32 4294901760, %v2066_v14 }
 0x471   :  { %3467 = vmatmul.mubr.f32.vlgmr.msra.gmra.mrb[4].mxu1 %v2067_v18 }
 0x472   :  { %3976 = vmatpush3.bf16.msra.mxu1 %v5111_v15  ;;  %3501 = vmatprep.mubr.msk.f32.mxu1 %vm4299_vm0, %v5410_v37  ;;  %v5441_v15 = vand.u32 4294901760, %v5063_v33  ;;  %v5446_v33 = vand.u32 4294901760, %v5073_v48  ;;  %v5452_v48 = vand.u32 4294901760, %v5089_v45 }
 0x473   :  { %3977 = vmatprep.subr.bf16.mxu1 %v5411_v41 }
 0x476   :  { %3979 = vmatpush3.bf16.msra.mxu1 %v5121_v56  ;;  %v5442_v56 = vand.u32 4294901760, %v5065_v46  ;;  %v4056_v46 = vpack.c.bf16 %v5446_v33, %v5445_v17 }
 0x477   :  { %3980 = vmatprep.subr.bf16.mxu1 %v5411_v41 }
 0x47a   :  { %3982 = vmatpush3.bf16.msra.mxu1 %v5131_v22  ;;  %v4050_v22 = vpack.c.bf16 %v5442_v56, %v5441_v15 }
 0x47b   :  { %3983 = vmatprep.subr.bf16.mxu1 %v5411_v41 }
 0x47e   :  { %3985 = vmatpush3.bf16.msra.mxu1 %v5141_v29  ;;  %v5447_v29 = vand.u32 4294901760, %v5076_v35  ;;  %v5453_v35 = vand.u32 4294901760, %v5091_v21 }
 0x47f   :  { %3986 = vmatprep.subr.bf16.mxu1 %v5411_v41 }
 0x482   :  { %3988 = vmatpush3.bf16.msra.mxu1 %v5151_v62  ;;  %v4059_v62 = vpack.c.bf16 %v5448_v0, %v5447_v29 }
 0x483   :  { %3989 = vmatprep.subr.bf16.mxu1 %v5411_v41 }
 0x486   :  { %3991 = vmatpush3.bf16.msra.mxu1 %v5161_v23  ;;  %v4062_v23 = vpack.c.bf16 %v5450_v11, %v5449_v9 }
 0x487   :  { %3992 = vmatprep.subr.bf16.mxu1 %v5411_v41 }
 0x48a   :  { %3994 = vmatpush3.bf16.msra.mxu1 %v5171_v55  ;;  %v4065_v55 = vpack.c.bf16 %v5452_v48, %v5451_v12 }
 0x48b   :  { %3995 = vmatprep.subr.bf16.mxu1 %v5411_v41 }
 0x48e   :  { %3997 = vmatpush3.bf16.msra.mxu1 %v5179_v50  ;;  %v4068_v50 = vpack.c.bf16 %v5454_v36, %v5453_v35 }
 0x48f   :  { %3998 = vmatprep.subr.bf16.mxu1 %v5411_v41 }
 0x491   :  { %3502 = vmatmul.mubr.f32.vlgmr.msra.gmra.mrb[4].mxu1 %v5208_v40 }
 0x492   :  { %4000 = vmatpush3.bf16.msra.mxu1 %v3999_v61  ;;  %3536 = vmatprep.mubr.msk.f32.mxu1 %vm4299_vm0, %v5410_v37 }
 0x493   :  { %4001 = vmatprep.subr.bf16.mxu1 %v5411_v41 }
 0x496   :  { %4003 = vmatpush3.bf16.msra.mxu1 %v4002_v30 }
 0x497   :  { %4004 = vmatprep.subr.bf16.mxu1 %v5411_v41 }
 0x49a   :  { %4006 = vmatpush3.bf16.msra.mxu1 %v4005_v42 }
 0x49b   :  { %4007 = vmatprep.subr.bf16.mxu1 %v5411_v41 }
 0x49e   :  { %4009 = vmatpush3.bf16.msra.mxu1 %v4008_v5 }
 0x49f   :  { %4010 = vmatprep.subr.bf16.mxu1 %v5411_v41 }
 0x4a2   :  { %4012 = vmatpush3.bf16.msra.mxu1 %v4011_v4 }
 0x4a3   :  { %4013 = vmatprep.subr.bf16.mxu1 %v5411_v41 }
 0x4a6   :  { %4015 = vmatpush3.bf16.msra.mxu1 %v4014_v27 }
 0x4a7   :  { %4016 = vmatprep.subr.bf16.mxu1 %v5411_v41 }
 0x4aa   :  { %4018 = vmatpush3.bf16.msra.mxu1 %v4017_v31 }
 0x4ab   :  { %4019 = vmatprep.subr.bf16.mxu1 %v5411_v41 }
 0x4ae   :  { %4021 = vmatpush3.bf16.msra.mxu1 %v4020_v34 }
 0x4af   :  { %4022 = vmatprep.subr.bf16.mxu1 %v5411_v41 }
 0x4b1   :  { %3537 = vmatmul.mubr.f32.vlgmr.msra.gmra.mrb[4].mxu1 %v2064_v53 }
 0x4b2   :  { %4024 = vmatpush3.bf16.msra.mxu1 %v5037_v52  ;;  %3571 = vmatprep.mubr.msk.f32.mxu1 %vm4299_vm0, %v5410_v37 }
 0x4b3   :  { %4025 = vmatprep.subr.bf16.mxu1 %v5411_v41 }
 0x4b6   :  { %4027 = vmatpush3.bf16.msra.mxu1 %v5041_v51 }
 0x4b7   :  { %4028 = vmatprep.subr.bf16.mxu1 %v5411_v41 }
 0x4ba   :  { %4030 = vmatpush3.bf16.msra.mxu1 %v5045_v6 }
 0x4bb   :  { %4031 = vmatprep.subr.bf16.mxu1 %v5411_v41 }
 0x4be   :  { %4033 = vmatpush3.bf16.msra.mxu1 %v5049_v60 }
 0x4bf   :  { %4034 = vmatprep.subr.bf16.mxu1 %v5411_v41 }
 0x4c2   :  { %4036 = vmatpush3.bf16.msra.mxu1 %v5053_v2 }
 0x4c3   :  { %4037 = vmatprep.subr.bf16.mxu1 %v5411_v41 }
 0x4c6   :  { %4039 = vmatpush3.bf16.msra.mxu1 %v5057_v38 }
 0x4c7   :  { %4040 = vmatprep.subr.bf16.mxu1 %v5411_v41 }
 0x4ca   :  { %4042 = vmatpush3.bf16.msra.mxu1 %v5085_v20 }
 0x4cb   :  { %4043 = vmatprep.subr.bf16.mxu1 %v5411_v41 }
 0x4ce   :  { %4045 = vmatpush3.bf16.msra.mxu1 %v5098_v3 }
 0x4cf   :  { %4046 = vmatprep.subr.bf16.mxu1 %v5411_v41 }
 0x4d1   :  { %3572 = vmatmul.mubr.f32.vlgmr.msra.gmra.mrb[4].mxu1 %v2065_v43 }
 0x4d2   :  { %4048 = vmatpush3.bf16.msra.mxu1 %v4047_v19  ;;  %3606 = vmatprep.mubr.msk.f32.mxu1 %vm4299_vm0, %v5410_v37 }
 0x4d3   :  { %4049 = vmatprep.subr.bf16.mxu1 %v5411_v41 }
 0x4d6   :  { %4051 = vmatpush3.bf16.msra.mxu1 %v4050_v22 }
 0x4d7   :  { %4052 = vmatprep.subr.bf16.mxu1 %v5411_v41 }
 0x4da   :  { %4054 = vmatpush3.bf16.msra.mxu1 %v4053_v16 }
 0x4db   :  { %4055 = vmatprep.subr.bf16.mxu1 %v5411_v41 }
 0x4de   :  { %4057 = vmatpush3.bf16.msra.mxu1 %v4056_v46 }
 0x4df   :  { %4058 = vmatprep.subr.bf16.mxu1 %v5411_v41 }
 0x4e2   :  { %4060 = vmatpush3.bf16.msra.mxu1 %v4059_v62 }
 0x4e3   :  { %4061 = vmatprep.subr.bf16.mxu1 %v5411_v41 }
 0x4e6   :  { %4063 = vmatpush3.bf16.msra.mxu1 %v4062_v23 }
 0x4e7   :  { %4064 = vmatprep.subr.bf16.mxu1 %v5411_v41 }
 0x4ea   :  { %4066 = vmatpush3.bf16.msra.mxu1 %v4065_v55 }
 0x4eb   :  { %4067 = vmatprep.subr.bf16.mxu1 %v5411_v41 }
 0x4ee   :  { %4069 = vmatpush3.bf16.msra.mxu1 %v4068_v50 }
 0x4ef   :  { %4070 = vmatprep.subr.bf16.mxu1 %v5411_v41 }
 0x4f1   :  { %3607 = vmatmul.mubr.f32.vlgmr.msra.gmra.mrb[4].mxu1 %v5208_v40 }
 0x4f2   :  { %4072 = vmatpush3.bf16.msra.mxu1 %v5037_v52  ;;  %3641 = vmatprep.mubr.msk.f32.mxu1 %vm4299_vm0, %v5410_v37  ;;  %v2647_v37 = vld [vmem:[%s5363_s5 + $0x3] ss:$0 sm:$0xff] }
 0x4f3   :  { %4073 = vmatprep.subr.bf16.mxu1 %v5411_v41 }
 0x4f6   :  { %4075 = vmatpush3.bf16.msra.mxu1 %v5041_v51 }
 0x4f7   :  { %4076 = vmatprep.subr.bf16.mxu1 %v5411_v41 }
 0x4fa   :  { %4078 = vmatpush3.bf16.msra.mxu1 %v5045_v6 }
 0x4fb   :  { %4079 = vmatprep.subr.bf16.mxu1 %v5411_v41 }
 0x4fe   :  { %4081 = vmatpush3.bf16.msra.mxu1 %v5049_v60 }
 0x4ff   :  { %4082 = vmatprep.subr.bf16.mxu1 %v5411_v41 }
 0x502   :  { %4084 = vmatpush3.bf16.msra.mxu1 %v5053_v2 }
 0x503   :  { %4085 = vmatprep.subr.bf16.mxu1 %v5411_v41 }
 0x506   :  { %4087 = vmatpush3.bf16.msra.mxu1 %v5057_v38 }
 0x507   :  { %4088 = vmatprep.subr.bf16.mxu1 %v5411_v41 }
 0x50a   :  { %4090 = vmatpush3.bf16.msra.mxu1 %v5085_v20 }
 0x50b   :  { %4091 = vmatprep.subr.bf16.mxu1 %v5411_v41 }
 0x50e   :  { %4093 = vmatpush3.bf16.msra.mxu1 %v5098_v3 }
 0x511   :  { %3642 = vmatmul.mubr.f32.vlgmr.msra.gmra.mrb[4].mxu1 %v5208_v40 }
 0x5e4   :  { %v2619_v52 = vpop.f32.mrb[4].mxu1 }
 0x5e5   :  { %v4099_v51 = vadd.f32 %v2647_v37, %v2619_v52  ;;  %v3643_v6 = vpop.f32.mrb[5].mxu1 }
 0x5e7   :  { %v2624_v60 = vmul.f32 0.1, %v4099_v51  ;;  %vm2623_vm5 = vcmp.gt.f32.partialorder %v4099_v51, 0.0 }
 0x5e9   :  { %v2625_v2 = vsel %vm2623_vm5, %v4099_v51, %v2624_v60 }
 0x5ea   :  { %2626 = vst [vmem:[#allocation11] sm:$0xff] %v2625_v2 }
 0x5eb   :  { %4272 = shalt.err (!%p4269_p2)
}
 0x5ec   :  { %s4273_s5 = scalar_lea.hbm %s5364_s6, 128 }
 0x5ed   :  { %p4274_p3 = scmp.ne.s32.totalorder %s5364_s6, %s4273_s5  ;;  %p4277_p4 = scmp.lt.u32.totalorder %s4273_s5, %s5364_s6 }
 0x5ef   :  { %p4279_p5 = pnand %p4277_p4, %p4274_p3 }
 0x5f1   :  { %4282 = shalt.err (!%p4279_p5)
}
 0x5f2   :  { %2636 = dma.vmem_to_hbm [thread:$0]  %s2634_s14, 128, %s5364_s6, [#allocation4]  }
 0x5f3   :  { %4289 = dma.done.wait [#allocation4], 128  }
 0x5f4   :  { %4290 = vsyncadd [#allocation4], 4294967168 }
 0x5f5   :  { %2640 = vsyncpa [#allocation3], 1 }
 0x5f6   :  { %2641 = vsyncpa [#allocation6], 1 }
 0x5f7   :  { %2642 = vsyncpa [#allocation9], 1 }
 0x5f8   :  { %2643 = vsyncpa [#allocation4], 1 }

</bundles_post_ra>
